<compile_context>
chip_gen: v7x
topology: tpu7x:2x2x1
jax: 0.10.0
libtpu: 0.0.40
codegen_flags: <defaults>
</compile_context>

<pallas_src>
import math
import functools

import numpy as np
import jax
import jax.numpy as jnp
from jax.experimental import pallas as pl
from jax.experimental.pallas import tpu as pltpu

LANE = 128


def _round_up(x, m):
    return (x + m - 1) // m * m


def _cdiv(a, b):
    return -(-a // b)


# --------------------------------------------------------------------------- #
# Fused actor+critic kernel.  One grid step == one tile of TB batch rows.
#   x_aug (TB, S+1)   bf16   [state, 1]
#   mu    (TB, M+1)   bf16   [meta_v, 1]
#   a1s   (S+1, (M+1)*2H) bf16  layer-1 hyper weights (actor|critic per head,
#                                bias row appended, 1/sqrt(S) folded in)
#   a2c   (128 + (M+1)*2H, 128) bf16  layer-2 hyper weights + bias block
#                                (1/sqrt(H) folded in; actor cols [0,A), critic col A)
# --------------------------------------------------------------------------- #
def _hyper_ac_kernel(x_ref, mu_ref, a1_ref, a2_ref, out_ref, *, n_meta_aug, hidden):
    h2 = 2 * hidden

    # Layer 1 on the MXU: (TB, S+1) @ (S+1, (M+1)*2H) -> f32 accumulate.
    q = jnp.dot(x_ref[...], a1_ref[...], preferred_element_type=jnp.float32)

    # h[b, :] = relu( sum_m mu[b, m] * q[b, m*2H:(m+1)*2H] )   (lane-aligned chunks)
    mu_f = mu_ref[...].astype(jnp.float32)
    h = mu_f[:, 0:1] * q[:, 0:h2]
    for m in range(1, n_meta_aug):
        h = h + mu_f[:, m:m + 1] * q[:, m * h2:(m + 1) * h2]
    h = jnp.maximum(h, 0.0).astype(jnp.bfloat16)          # (TB, 2H)

    # Layer 2: z2 = [mu (padded to 128 lanes) | mu[:,0]*h | ... | mu[:,M]*h]
    # (bias head folded in as the first 128-wide chunk), one big MXU matmul.
    mu_b = mu_ref[...]
    tb = mu_b.shape[0]
    mu_pad = jnp.concatenate(
        [mu_b, jnp.zeros((tb, LANE - n_meta_aug), jnp.bfloat16)], axis=-1)
    z2 = jnp.concatenate(
        [mu_pad] + [mu_b[:, m:m + 1] * h for m in range(n_meta_aug)], axis=-1)
    out_ref[...] = jnp.dot(z2, a2_ref[...], preferred_element_type=jnp.float32)


def _choose_batch_tiling(batch, block_b):
    """Batch padded only to the next multiple of 8; tiles are multiples of 8;
    force >= 2 grid steps (when possible) so v7x's second TC gets work."""
    b8 = _round_up(max(batch, 1), 8)
    block_b = max(8, _round_up(block_b, 8))
    ntiles = _cdiv(b8, block_b)
    if ntiles == 1 and b8 >= 16:
        ntiles = 2
    tb = _round_up(_cdiv(b8, ntiles), 8)
    bp = ntiles * tb
    return tb, bp, ntiles


def hyper_ac_forward(meta_v, state, packed, *, block_b=256):
    """meta_v: (B, M) f32, state: (B, S) f32 -> (B, 128) f32 output slab
    (actor logits in lanes [0, A), critic value in lane A)."""
    a1_stack, a2_comb, dims = packed
    mp1, s_dim, hidden, op = dims["Mp1"], dims["S"], dims["H"], dims["OP"]
    b = state.shape[0]

    mu = jnp.concatenate(
        [meta_v, jnp.ones((b, 1), meta_v.dtype)], axis=-1).astype(jnp.bfloat16)
    x_aug = jnp.concatenate(
        [state, jnp.ones((b, 1), state.dtype)], axis=-1).astype(jnp.bfloat16)

    tb, bp, ntiles = _choose_batch_tiling(b, block_b)
    if bp != b:
        x_aug = jnp.pad(x_aug, ((0, bp - b), (0, 0)))
        mu = jnp.pad(mu, ((0, bp - b), (0, 0)))

    kernel = functools.partial(_hyper_ac_kernel, n_meta_aug=mp1, hidden=hidden)

    out = pl.pallas_call(
        kernel,
        out_shape=jax.ShapeDtypeStruct((bp, op), jnp.float32),
        grid=(ntiles,),
        in_specs=[
            pl.BlockSpec((tb, s_dim + 1), lambda i: (i, 0)),       # state tile
            pl.BlockSpec((tb, mp1), lambda i: (i, 0)),             # mu tile
            pl.BlockSpec(a1_stack.shape, lambda i: (0, 0)),        # layer-1 weights (resident)
            pl.BlockSpec(a2_comb.shape, lambda i: (0, 0)),         # layer-2 weights (resident)
        ],
        out_specs=pl.BlockSpec((tb, op), lambda i: (i, 0)),
        compiler_params=pltpu.CompilerParams(
            dimension_semantics=("parallel",),                     # shard batch over TCs
            vmem_limit_bytes=32 * 1024 * 1024),
    )(x_aug, mu, a1_stack, a2_comb)
    return out[:b]


# --------------------------------------------------------------------------- #
# Parameter init / fused packing and plain-JAX reference.
# --------------------------------------------------------------------------- #
def init_hyper_params(key, meta_v_dim, state_dim, out_dim, hidden_dim):
    """Deterministic synthetic params in augmented form (last head row == bias)."""
    mp1 = meta_v_dim + 1
    ks = jax.random.split(key, 4)
    a1 = 0.05 * jax.random.normal(ks[0], (mp1, state_dim, hidden_dim), jnp.float32)
    b1 = 0.05 * jax.random.normal(ks[1], (mp1, hidden_dim), jnp.float32)
    a2 = 0.05 * jax.random.normal(ks[2], (mp1, hidden_dim, out_dim), jnp.float32)
    b2 = 0.05 * jax.random.normal(ks[3], (mp1, out_dim), jnp.float32)
    return a1, b1, a2, b2


def pack_fused_params(actor_raw, critic_raw, *, scale=True):
    """Pack actor+critic raw params into the fused bf16 form the kernel consumes."""
    a1a, b1a, a2a, b2a = actor_raw
    a1c, b1c, a2c, b2c = critic_raw
    mp1, s_dim, hidden = a1a.shape
    act_dim = a2a.shape[2]
    op = LANE
    assert act_dim + 1 <= op
    s1 = 1.0 / math.sqrt(s_dim) if scale else 1.0
    s2 = 1.0 / math.sqrt(hidden) if scale else 1.0
    h2 = 2 * hidden

    # Layer 1: (S+1, Mp1*2H); per head m the 2H block is [actor H | critic H],
    # 1/sqrt(S) folded into the weight rows, dynamic bias as the (S+1)-th row.
    w1 = jnp.concatenate([a1a, a1c], axis=2) * s1                       # (Mp1, S, 2H)
    b1 = jnp.concatenate([b1a, b1c], axis=1)                            # (Mp1, 2H)
    a1_stack = jnp.concatenate([w1, b1[:, None, :]], axis=1)            # (Mp1, S+1, 2H)
    a1_stack = jnp.transpose(a1_stack, (1, 0, 2)).reshape(s_dim + 1, mp1 * h2)

    # Layer 2 combined: rows = [128-row bias block] + Mp1 * 2H weight rows,
    # columns = 128 output lanes (actor [0,A), critic lane A), 1/sqrt(H) folded in.
    b2_blk = jnp.zeros((LANE, op), jnp.float32)
    b2_blk = b2_blk.at[:mp1, :act_dim].set(b2a)
    b2_blk = b2_blk.at[:mp1, act_dim].set(b2c[:, 0])
    wa = jnp.zeros((mp1, hidden, op), jnp.float32).at[:, :, :act_dim].set(a2a * s2)
    wc = jnp.zeros((mp1, hidden, op), jnp.float32).at[:, :, act_dim].set(a2c[:, :, 0] * s2)
    w2 = jnp.concatenate([wa, wc], axis=1).reshape(mp1 * h2, op)        # (Mp1*2H, 128)
    a2_comb = jnp.concatenate([b2_blk, w2], axis=0)                     # (128+Mp1*2H, 128)

    dims = dict(Mp1=mp1, S=s_dim, H=hidden, A=act_dim, OP=op)
    return a1_stack.astype(jnp.bfloat16), a2_comb.astype(jnp.bfloat16), dims


def hyper_net_reference(meta_v, state, raw, *, scale=True):
    """Plain-JAX f32 HIGHEST reference for one hyper network."""
    a1, b1, a2, b2 = raw
    _, s_dim, hidden = a1.shape
    hi = jax.lax.Precision.HIGHEST
    mu = jnp.concatenate([meta_v, jnp.ones((meta_v.shape[0], 1), meta_v.dtype)], -1)
    w1 = jnp.einsum('bm,msh->bsh', mu, a1, precision=hi)
    bb1 = jnp.einsum('bm,mh->bh', mu, b1, precision=hi)
    w2 = jnp.einsum('bm,mho->bho', mu, a2, precision=hi)
    bb2 = jnp.einsum('bm,mo->bo', mu, b2, precision=hi)
    h = jnp.einsum('bs,bsh->bh', state, w1, precision=hi)
    if scale:
        h = h / jnp.sqrt(float(s_dim))
    h = jnp.maximum(h + bb1, 0.0)
    o = jnp.einsum('bh,bho->bo', h, w2, precision=hi)
    if scale:
        o = o / jnp.sqrt(float(hidden))
    return o + bb2


# --------------------------------------------------------------------------- #
# Module wrapper (act / evaluate glue is cheap plain-JAX, not kernel work).
# --------------------------------------------------------------------------- #
class HyperAC1LayerNoAugPallas:
    def __init__(self, meta_v_dim, state_dim, action_dim, dynamic_hidden_dim=128,
                 scale=True, key=None):
        if key is None:
            key = jax.random.PRNGKey(0)
        # TODO(synk): exact HyperNetwork1LayerNoAug source not provided; the 1/sqrt
        # scaling convention (scale=True, bias unscaled) is an assumption.
        self.meta_v_dim = meta_v_dim
        self.state_dim = state_dim
        self.action_dim = action_dim
        self.hidden_dim = dynamic_hidden_dim
        self.scale = scale
        ka, kc = jax.random.split(key)
        self.actor_raw = init_hyper_params(ka, meta_v_dim, state_dim, action_dim,
                                           dynamic_hidden_dim)
        self.critic_raw = init_hyper_params(kc, meta_v_dim, state_dim, 1,
                                            dynamic_hidden_dim)
        self.packed = pack_fused_params(self.actor_raw, self.critic_raw, scale=scale)

    # Single fused kernel call -> (logits, values).
    def forward_both(self, meta_v, state):
        out = hyper_ac_forward(meta_v, state, self.packed)
        a = self.action_dim
        return out[:, :a], out[:, a:a + 1]

    def actor_logits(self, meta_v, state):
        return self.forward_both(meta_v, state)[0]

    def critic_values(self, meta_v, state):
        return self.forward_both(meta_v, state)[1]

    def act(self, key, meta_v, state, ret_prob=False, pos_emb=None):
        logits = self.actor_logits(meta_v, state)
        action = jax.random.categorical(key, logits, axis=-1)
        logp = jax.nn.log_softmax(logits, axis=-1)
        action_logprob = jnp.take_along_axis(logp, action[:, None], axis=-1)[:, 0]
        if ret_prob:
            return action, action_logprob, jax.nn.softmax(logits, axis=-1)
        return action, action_logprob

    def evaluate(self, meta_v, state, action, pos_emb=None):
        logits, state_values = self.forward_both(meta_v, state)
        logp = jax.nn.log_softmax(logits, axis=-1)
        action_logprobs = jnp.take_along_axis(logp, action[:, None], axis=-1)[:, 0]
        dist_entropy = -jnp.sum(jnp.exp(logp) * logp, axis=-1)
        return action_logprobs, state_values, dist_entropy

    def get_dynamic_weights(self, meta_v, pos_emb=None):
        # Plain-JAX glue equivalent of actor.get_weight(meta_v).
        a1, b1, a2, b2 = self.actor_raw
        mu = jnp.concatenate([meta_v, jnp.ones((meta_v.shape[0], 1), meta_v.dtype)], -1)
        w1 = jnp.einsum('bm,msh->bsh', mu, a1)
        bb1 = mu @ b1
        w2 = jnp.einsum('bm,mho->bho', mu, a2)
        bb2 = mu @ b2
        return w1, bb1, w2, bb2


if __name__ == "__main__":
    B = 8
    META_V_DIM = 8
    STATE_DIM = 16
    ACTION_DIM = 8
    HIDDEN = 128

    root = jax.random.PRNGKey(0)
    k_param, k_meta, k_state, k_act = jax.random.split(root, 4)

    model = HyperAC1LayerNoAugPallas(META_V_DIM, STATE_DIM, ACTION_DIM,
                                     dynamic_hidden_dim=HIDDEN, scale=True, key=k_param)

    meta_v = jax.random.normal(k_meta, (B, META_V_DIM), jnp.float32)
    state = jax.random.normal(k_state, (B, STATE_DIM), jnp.float32)

    # Kernel runs bf16 operands with f32 accumulation; compare against the f32
    # HIGHEST reference with tolerance covering bf16 weight/activation storage.
    logits, values = model.forward_both(meta_v, state)
    logits, values = jax.block_until_ready((logits, values))
    logits_ref = hyper_net_reference(meta_v, state, model.actor_raw,
                                     scale=True)[:, :ACTION_DIM]
    values_ref = hyper_net_reference(meta_v, state, model.critic_raw, scale=True)[:, :1]
    np.testing.assert_allclose(np.asarray(logits), np.asarray(logits_ref),
                               rtol=2.5e-2, atol=2.5e-2)
    np.testing.assert_allclose(np.asarray(values), np.asarray(values_ref),
                               rtol=2.5e-2, atol=2.5e-2)

    # Exercise the ragged-batch / multi-tile path (B=13 -> padded to 16, grid=(2,)).
    B2 = 13
    meta_v2 = jax.random.normal(jax.random.fold_in(k_meta, 1), (B2, META_V_DIM), jnp.float32)
    state2 = jax.random.normal(jax.random.fold_in(k_state, 1), (B2, STATE_DIM), jnp.float32)
    logits2, values2 = jax.block_until_ready(model.forward_both(meta_v2, state2))
    logits2_ref = hyper_net_reference(meta_v2, state2, model.actor_raw,
                                      scale=True)[:, :ACTION_DIM]
    values2_ref = hyper_net_reference(meta_v2, state2, model.critic_raw, scale=True)[:, :1]
    np.testing.assert_allclose(np.asarray(logits2), np.asarray(logits2_ref),
                               rtol=2.5e-2, atol=2.5e-2)
    np.testing.assert_allclose(np.asarray(values2), np.asarray(values2_ref),
                               rtol=2.5e-2, atol=2.5e-2)

    # exercise act / evaluate / get_dynamic_weights glue
    action, action_logprob = model.act(k_act, meta_v, state)
    action_logprobs, state_values, dist_entropy = model.evaluate(meta_v, state, action)
    dyn_w = model.get_dynamic_weights(meta_v)
    jax.block_until_ready((action, action_logprob, action_logprobs,
                           state_values, dist_entropy, dyn_w))

    print("KERNEL_OK")
</pallas_src>

<mosaic_0001>
module attributes {stable_mosaic.version = 11 : i64} {
  func.func @_hyper_ac_kernel(%arg0: i32, %arg1: memref<8x17xbf16, #tpu.memory_space<vmem>>, %arg2: memref<8x9xbf16, #tpu.memory_space<vmem>>, %arg3: memref<17x2304xbf16, #tpu.memory_space<vmem>>, %arg4: memref<2432x128xbf16, #tpu.memory_space<vmem>>, %arg5: memref<8x128xf32, #tpu.memory_space<vmem>>) attributes {dimension_semantics = [#tpu.dimension_semantics<parallel>], iteration_bounds = array<i64: 1>, scalar_prefetch = 0 : i64, scratch_operands = 0 : i64, tpu.core_type = #tpu.core_type<tc>, window_params = [{transform_indices = @transform_0, window_bounds = array<i64: 8, 17>}, {transform_indices = @transform_1, window_bounds = array<i64: 8, 9>}, {pipeline_mode = #tpu.pipeline_mode<synchronous>, transform_indices = @transform_2, window_bounds = array<i64: 17, 2304>}, {pipeline_mode = #tpu.pipeline_mode<synchronous>, transform_indices = @transform_3, window_bounds = array<i64: 2432, 128>}, {transform_indices = @transform_4, window_bounds = array<i64: 8, 128>}]} {
    %c0 = arith.constant 0 : index
    %c0_0 = arith.constant 0 : index
    %0 = vector.load %arg1[%c0, %c0_0] : memref<8x17xbf16, #tpu.memory_space<vmem>>, vector<8x17xbf16>
    %c0_1 = arith.constant 0 : index
    %c0_2 = arith.constant 0 : index
    %1 = vector.load %arg3[%c0_1, %c0_2] : memref<17x2304xbf16, #tpu.memory_space<vmem>>, vector<17x2304xbf16>
    %cst = arith.constant dense<0.000000e+00> : vector<8x2304xf32>
    %2 = tpu.matmul %0, %1, %cst {dimension_numbers = #tpu.dot_dimension_numbers<[1], [0], [0], [1], [0, 0, 1, 1], [], []>} : vector<8x17xbf16>, vector<17x2304xbf16>, vector<8x2304xf32> -> vector<8x2304xf32>
    %c0_3 = arith.constant 0 : index
    %c0_4 = arith.constant 0 : index
    %3 = vector.load %arg2[%c0_3, %c0_4] : memref<8x9xbf16, #tpu.memory_space<vmem>>, vector<8x9xbf16>
    %4 = arith.extf %3 : vector<8x9xbf16> to vector<8x9xf32>
    %5 = vector.extract_strided_slice %4 {offsets = [0, 0], sizes = [8, 1], strides = [1, 1]} : vector<8x9xf32> to vector<8x1xf32>
    %6 = vector.extract_strided_slice %2 {offsets = [0, 0], sizes = [8, 256], strides = [1, 1]} : vector<8x2304xf32> to vector<8x256xf32>
    %7 = vector.broadcast %5 : vector<8x1xf32> to vector<8x256xf32>
    %8 = arith.mulf %7, %6 : vector<8x256xf32>
    %9 = vector.extract_strided_slice %4 {offsets = [0, 1], sizes = [8, 1], strides = [1, 1]} : vector<8x9xf32> to vector<8x1xf32>
    %10 = vector.extract_strided_slice %2 {offsets = [0, 256], sizes = [8, 256], strides = [1, 1]} : vector<8x2304xf32> to vector<8x256xf32>
    %11 = vector.broadcast %9 : vector<8x1xf32> to vector<8x256xf32>
    %12 = arith.mulf %11, %10 : vector<8x256xf32>
    %13 = arith.addf %8, %12 : vector<8x256xf32>
    %14 = vector.extract_strided_slice %4 {offsets = [0, 2], sizes = [8, 1], strides = [1, 1]} : vector<8x9xf32> to vector<8x1xf32>
    %15 = vector.extract_strided_slice %2 {offsets = [0, 512], sizes = [8, 256], strides = [1, 1]} : vector<8x2304xf32> to vector<8x256xf32>
    %16 = vector.broadcast %14 : vector<8x1xf32> to vector<8x256xf32>
    %17 = arith.mulf %16, %15 : vector<8x256xf32>
    %18 = arith.addf %13, %17 : vector<8x256xf32>
    %19 = vector.extract_strided_slice %4 {offsets = [0, 3], sizes = [8, 1], strides = [1, 1]} : vector<8x9xf32> to vector<8x1xf32>
    %20 = vector.extract_strided_slice %2 {offsets = [0, 768], sizes = [8, 256], strides = [1, 1]} : vector<8x2304xf32> to vector<8x256xf32>
    %21 = vector.broadcast %19 : vector<8x1xf32> to vector<8x256xf32>
    %22 = arith.mulf %21, %20 : vector<8x256xf32>
    %23 = arith.addf %18, %22 : vector<8x256xf32>
    %24 = vector.extract_strided_slice %4 {offsets = [0, 4], sizes = [8, 1], strides = [1, 1]} : vector<8x9xf32> to vector<8x1xf32>
    %25 = vector.extract_strided_slice %2 {offsets = [0, 1024], sizes = [8, 256], strides = [1, 1]} : vector<8x2304xf32> to vector<8x256xf32>
    %26 = vector.broadcast %24 : vector<8x1xf32> to vector<8x256xf32>
    %27 = arith.mulf %26, %25 : vector<8x256xf32>
    %28 = arith.addf %23, %27 : vector<8x256xf32>
    %29 = vector.extract_strided_slice %4 {offsets = [0, 5], sizes = [8, 1], strides = [1, 1]} : vector<8x9xf32> to vector<8x1xf32>
    %30 = vector.extract_strided_slice %2 {offsets = [0, 1280], sizes = [8, 256], strides = [1, 1]} : vector<8x2304xf32> to vector<8x256xf32>
    %31 = vector.broadcast %29 : vector<8x1xf32> to vector<8x256xf32>
    %32 = arith.mulf %31, %30 : vector<8x256xf32>
    %33 = arith.addf %28, %32 : vector<8x256xf32>
    %34 = vector.extract_strided_slice %4 {offsets = [0, 6], sizes = [8, 1], strides = [1, 1]} : vector<8x9xf32> to vector<8x1xf32>
    %35 = vector.extract_strided_slice %2 {offsets = [0, 1536], sizes = [8, 256], strides = [1, 1]} : vector<8x2304xf32> to vector<8x256xf32>
    %36 = vector.broadcast %34 : vector<8x1xf32> to vector<8x256xf32>
    %37 = arith.mulf %36, %35 : vector<8x256xf32>
    %38 = arith.addf %33, %37 : vector<8x256xf32>
    %39 = vector.extract_strided_slice %4 {offsets = [0, 7], sizes = [8, 1], strides = [1, 1]} : vector<8x9xf32> to vector<8x1xf32>
    %40 = vector.extract_strided_slice %2 {offsets = [0, 1792], sizes = [8, 256], strides = [1, 1]} : vector<8x2304xf32> to vector<8x256xf32>
    %41 = vector.broadcast %39 : vector<8x1xf32> to vector<8x256xf32>
    %42 = arith.mulf %41, %40 : vector<8x256xf32>
    %43 = arith.addf %38, %42 : vector<8x256xf32>
    %44 = vector.extract_strided_slice %4 {offsets = [0, 8], sizes = [8, 1], strides = [1, 1]} : vector<8x9xf32> to vector<8x1xf32>
    %45 = vector.extract_strided_slice %2 {offsets = [0, 2048], sizes = [8, 256], strides = [1, 1]} : vector<8x2304xf32> to vector<8x256xf32>
    %46 = vector.broadcast %44 : vector<8x1xf32> to vector<8x256xf32>
    %47 = arith.mulf %46, %45 : vector<8x256xf32>
    %48 = arith.addf %43, %47 : vector<8x256xf32>
    %cst_5 = arith.constant 0.000000e+00 : f32
    %49 = vector.broadcast %cst_5 : f32 to vector<8x256xf32>
    %50 = arith.maximumf %48, %49 : vector<8x256xf32>
    %51 = arith.truncf %50 : vector<8x256xf32> to vector<8x256xbf16>
    %c0_6 = arith.constant 0 : index
    %c0_7 = arith.constant 0 : index
    %52 = vector.load %arg2[%c0_6, %c0_7] : memref<8x9xbf16, #tpu.memory_space<vmem>>, vector<8x9xbf16>
    %cst_8 = arith.constant 0.000000e+00 : bf16
    %53 = vector.broadcast %cst_8 : bf16 to vector<8x119xbf16>
    %54 = tpu.concatenate %52, %53 in 1 : vector<8x9xbf16>, vector<8x119xbf16> -> vector<8x128xbf16>
    %55 = vector.extract_strided_slice %52 {offsets = [0, 0], sizes = [8, 1], strides = [1, 1]} : vector<8x9xbf16> to vector<8x1xbf16>
    %56 = vector.broadcast %55 : vector<8x1xbf16> to vector<8x256xbf16>
    %57 = arith.mulf %56, %51 : vector<8x256xbf16>
    %58 = vector.extract_strided_slice %52 {offsets = [0, 1], sizes = [8, 1], strides = [1, 1]} : vector<8x9xbf16> to vector<8x1xbf16>
    %59 = vector.broadcast %58 : vector<8x1xbf16> to vector<8x256xbf16>
    %60 = arith.mulf %59, %51 : vector<8x256xbf16>
    %61 = vector.extract_strided_slice %52 {offsets = [0, 2], sizes = [8, 1], strides = [1, 1]} : vector<8x9xbf16> to vector<8x1xbf16>
    %62 = vector.broadcast %61 : vector<8x1xbf16> to vector<8x256xbf16>
    %63 = arith.mulf %62, %51 : vector<8x256xbf16>
    %64 = vector.extract_strided_slice %52 {offsets = [0, 3], sizes = [8, 1], strides = [1, 1]} : vector<8x9xbf16> to vector<8x1xbf16>
    %65 = vector.broadcast %64 : vector<8x1xbf16> to vector<8x256xbf16>
    %66 = arith.mulf %65, %51 : vector<8x256xbf16>
    %67 = vector.extract_strided_slice %52 {offsets = [0, 4], sizes = [8, 1], strides = [1, 1]} : vector<8x9xbf16> to vector<8x1xbf16>
    %68 = vector.broadcast %67 : vector<8x1xbf16> to vector<8x256xbf16>
    %69 = arith.mulf %68, %51 : vector<8x256xbf16>
    %70 = vector.extract_strided_slice %52 {offsets = [0, 5], sizes = [8, 1], strides = [1, 1]} : vector<8x9xbf16> to vector<8x1xbf16>
    %71 = vector.broadcast %70 : vector<8x1xbf16> to vector<8x256xbf16>
    %72 = arith.mulf %71, %51 : vector<8x256xbf16>
    %73 = vector.extract_strided_slice %52 {offsets = [0, 6], sizes = [8, 1], strides = [1, 1]} : vector<8x9xbf16> to vector<8x1xbf16>
    %74 = vector.broadcast %73 : vector<8x1xbf16> to vector<8x256xbf16>
    %75 = arith.mulf %74, %51 : vector<8x256xbf16>
    %76 = vector.extract_strided_slice %52 {offsets = [0, 7], sizes = [8, 1], strides = [1, 1]} : vector<8x9xbf16> to vector<8x1xbf16>
    %77 = vector.broadcast %76 : vector<8x1xbf16> to vector<8x256xbf16>
    %78 = arith.mulf %77, %51 : vector<8x256xbf16>
    %79 = vector.extract_strided_slice %52 {offsets = [0, 8], sizes = [8, 1], strides = [1, 1]} : vector<8x9xbf16> to vector<8x1xbf16>
    %80 = vector.broadcast %79 : vector<8x1xbf16> to vector<8x256xbf16>
    %81 = arith.mulf %80, %51 : vector<8x256xbf16>
    %82 = tpu.concatenate %54, %57, %60, %63, %66, %69, %72, %75, %78, %81 in 1 : vector<8x128xbf16>, vector<8x256xbf16>, vector<8x256xbf16>, vector<8x256xbf16>, vector<8x256xbf16>, vector<8x256xbf16>, vector<8x256xbf16>, vector<8x256xbf16>, vector<8x256xbf16>, vector<8x256xbf16> -> vector<8x2432xbf16>
    %c0_9 = arith.constant 0 : index
    %c0_10 = arith.constant 0 : index
    %83 = vector.load %arg4[%c0_9, %c0_10] : memref<2432x128xbf16, #tpu.memory_space<vmem>>, vector<2432x128xbf16>
    %cst_11 = arith.constant dense<0.000000e+00> : vector<8x128xf32>
    %84 = tpu.matmul %82, %83, %cst_11 {dimension_numbers = #tpu.dot_dimension_numbers<[1], [0], [0], [1], [0, 0, 1, 1], [], []>} : vector<8x2432xbf16>, vector<2432x128xbf16>, vector<8x128xf32> -> vector<8x128xf32>
    %c0_12 = arith.constant 0 : index
    %c0_13 = arith.constant 0 : index
    %85 = vector.load %arg5[%c0_12, %c0_13] : memref<8x128xf32, #tpu.memory_space<vmem>>, vector<8x128xf32>
    tpu.vector_store %arg5[%c0_12, %c0_13], %84 {strides = array<i32>} : memref<8x128xf32, #tpu.memory_space<vmem>>, vector<8x128xf32>,
    return
  }
  func.func @transform_0(%arg0: i32) -> (i32, i32) {
    %c0_i32 = arith.constant 0 : i32
    %c0_i32_0 = arith.constant 0 : i32
    return %arg0, %c0_i32 : i32, i32
  }
  func.func @transform_1(%arg0: i32) -> (i32, i32) {
    %c0_i32 = arith.constant 0 : i32
    %c0_i32_0 = arith.constant 0 : i32
    return %arg0, %c0_i32 : i32, i32
  }
  func.func @transform_2(%arg0: i32) -> (i32, i32) {
    %c0_i32 = arith.constant 0 : i32
    %c0_i32_0 = arith.constant 0 : i32
    %c0_i32_1 = arith.constant 0 : i32
    return %c0_i32, %c0_i32_0 : i32, i32
  }
  func.func @transform_3(%arg0: i32) -> (i32, i32) {
    %c0_i32 = arith.constant 0 : i32
    %c0_i32_0 = arith.constant 0 : i32
    %c0_i32_1 = arith.constant 0 : i32
    return %c0_i32, %c0_i32_0 : i32, i32
  }
  func.func @transform_4(%arg0: i32) -> (i32, i32) {
    %c0_i32 = arith.constant 0 : i32
    %c0_i32_0 = arith.constant 0 : i32
    return %arg0, %c0_i32 : i32, i32
  }
}

</mosaic_0001>

<bundles_post_ra>
// kernel: tpu_custom_call.1
= control target key start
LH: loop header
LB: loop body
LE: loop exit
PB: predicated region body
PF: predicated region fallthrough
CT: control target
= control target key end

     0   :  { %9 = vsyncpa [#allocation3], 0  ;;  %s3634_s0 = inlined_call_operand.hbm [shape: bf16[8,17], index: 0, kind: input, shape index: {}]   ;;  %s3635_s1 = inlined_call_operand.hbm [shape: bf16[8,9], index: 1, kind: input, shape index: {}]   ;;  %s3636_s2 = inlined_call_operand.hbm [shape: bf16[17,2304], index: 2, kind: input, shape index: {}]   ;;  %s3637_s3 = inlined_call_operand.hbm [shape: bf16[2432,128], index: 3, kind: input, shape index: {}]   ;;  %s3638_s4 = inlined_call_operand.hbm [shape: f32[8,128], index: 4, kind: output, shape index: {}]  }
   0x1   :  { %10 = vsyncpa [#allocation6], 0 }
   0x2   :  { %11 = vsyncpa [#allocation9], 0 }
   0x3   :  { %12 = vsyncpa [#allocation4], 0  ;;  %s3356_s15 = smov [#allocation5]   ;;  %s3357_s17 = smov [#allocation2]  }
   0x4   :  { %s29_s16 = sshll.u32 %s3356_s15, 4  ;;  %s19_s18 = sshll.u32 %s3357_s17, 4  ;;  %s30_s16 = int_to_ptr.vmem [resolvable:$true] %s29_s16  ;;  %s20_s18 = int_to_ptr.vmem [resolvable:$true] %s19_s18 }
   0x5   :  { %s3238_s21 = scalar_lea.hbm %s3635_s1, 64 }
   0x6   :  { %p3239_p0 = scmp.ne.s32.totalorder %s3635_s1, %s3238_s21  ;;  %p3242_p1 = scmp.lt.u32.totalorder %s3238_s21, %s3635_s1 }
   0x8   :  { %p3244_p2 = pnand %p3242_p1, %p3239_p0 }
   0xa   :  { %3247 = shalt.err (!%p3244_p2)
}
   0xb   :  { %s3248_s26 = scalar_lea.vmem %s30_s16, 64  ;;  %p3253_p4 = scmp.lt.s32.totalorder %s30_s16, %s30_s16 }
   0xc   :  { %p3249_p3 = scmp.ne.s32.totalorder %s30_s16, %s3248_s26  ;;  %p3254_p5 = scmp.lt.s32.totalorder %s3248_s26, %s3248_s26 }
   0xe   :  { %p3255_p6 = por %p3254_p5, %p3253_p4 }
  0x10   :  { %p3256_p7 = pnand %p3255_p6, %p3249_p3 }
  0x12   :  { %3259 = shalt.err (!%p3256_p7)
}
  0x13   :  { %32 = dma.hbm_to_vmem [thread:$0]  %s3635_s1, 64, %s30_s16, [#allocation6]  }
  0x14   :  { %s3260_s5 = scalar_lea.hbm %s3634_s0, 64 }
  0x15   :  { %p3261_p8 = scmp.ne.s32.totalorder %s3634_s0, %s3260_s5  ;;  %p3264_p9 = scmp.lt.u32.totalorder %s3260_s5, %s3634_s0 }
  0x17   :  { %p3266_p10 = pnand %p3264_p9, %p3261_p8 }
  0x19   :  { %3269 = shalt.err (!%p3266_p10)
}
  0x1a   :  { %s3270_s10 = scalar_lea.vmem %s20_s18, 64  ;;  %p3275_p12 = scmp.lt.s32.totalorder %s20_s18, %s20_s18 }
  0x1b   :  { %p3271_p11 = scmp.ne.s32.totalorder %s20_s18, %s3270_s10  ;;  %p3276_p13 = scmp.lt.s32.totalorder %s3270_s10, %s3270_s10 }
  0x1d   :  { %p3277_p0 = por %p3276_p13, %p3275_p12 }
  0x1f   :  { %p3278_p1 = pnand %p3277_p0, %p3271_p11 }
  0x21   :  { %3281 = shalt.err (!%p3278_p1)
}
  0x22   :  { %22 = dma.hbm_to_vmem [thread:$0]  %s3634_s0, 64, %s20_s18, [#allocation3]  }
  0x23   :  { %s3358_s12 = smov [#allocation7]   ;;  %s3282_s16 = scalar_lea.hbm %s3636_s2, 3456 }
  0x24   :  { %s38_s13 = sshll.u32 %s3358_s12, 4  ;;  %p3283_p2 = scmp.ne.s32.totalorder %s3636_s2, %s3282_s16  ;;  %s39_s13 = int_to_ptr.vmem [resolvable:$true] %s38_s13 }
  0x25   :  { %p3286_p3 = scmp.lt.u32.totalorder %s3282_s16, %s3636_s2 }
  0x27   :  { %p3288_p4 = pnand %p3286_p3, %p3283_p2 }
  0x29   :  { %3291 = shalt.err (!%p3288_p4)
}
  0x2a   :  { %s3292_s22 = scalar_lea.vmem %s39_s13, 3456  ;;  %p3297_p6 = scmp.lt.s32.totalorder %s39_s13, %s39_s13 }
  0x2b   :  { %p3293_p5 = scmp.ne.s32.totalorder %s39_s13, %s3292_s22  ;;  %p3298_p7 = scmp.lt.s32.totalorder %s3292_s22, %s3292_s22 }
  0x2d   :  { %p3299_p8 = por %p3298_p7, %p3297_p6 }
  0x2f   :  { %p3300_p9 = pnand %p3299_p8, %p3293_p5 }
  0x31   :  { %3303 = shalt.err (!%p3300_p9)
}
  0x32   :  { %s3359_s0 = smov 1152   ;;  %s3360_s18 = smov 72  }
  0x33   :  { %44 = dma.hbm_to_vmem [thread:$0]  %s3636_s2, 3456, %s39_s13, [#allocation6], %s3359_s0, %s3359_s0, %s3360_s18  }
  0x34   :  { %s3361_s25 = smov [#allocation8]   ;;  %s3304_s29 = scalar_lea.hbm %s3637_s3, 19456 }
  0x35   :  { %s50_s26 = sshll.u32 %s3361_s25, 4  ;;  %p3305_p10 = scmp.ne.s32.totalorder %s3637_s3, %s3304_s29  ;;  %s51_s26 = int_to_ptr.vmem [resolvable:$true] %s50_s26 }
  0x36   :  { %p3308_p11 = scmp.lt.u32.totalorder %s3304_s29, %s3637_s3 }
  0x38   :  { %p3310_p12 = pnand %p3308_p11, %p3305_p10 }
  0x3a   :  { %3313 = shalt.err (!%p3310_p12)
}
  0x3b   :  { %s3314_s8 = scalar_lea.vmem %s51_s26, 19456  ;;  %p3319_p0 = scmp.lt.s32.totalorder %s51_s26, %s51_s26 }
  0x3c   :  { %p3315_p13 = scmp.ne.s32.totalorder %s51_s26, %s3314_s8  ;;  %p3320_p1 = scmp.lt.s32.totalorder %s3314_s8, %s3314_s8 }
  0x3e   :  { %p3321_p2 = por %p3320_p1, %p3319_p0 }
  0x40   :  { %p3322_p3 = pnand %p3321_p2, %p3315_p13 }
  0x42   :  { %3325 = shalt.err (!%p3322_p3)
}
  0x43   :  { %s3362_s2 = smov 64   ;;  %s3363_s9 = smov 4  }
  0x44   :  { %56 = dma.hbm_to_vmem [thread:$0]  %s3637_s3, 19456, %s51_s26, [#allocation9], %s3362_s2, %s3362_s2, %s3363_s9  }
  0x45   :  { %3348 = dma.done.wait [#allocation3], 64  }
  0x46   :  { %3349 = vsyncadd [#allocation3], 4294967232 }
  0x47   :  { %3350 = dma.done.wait [#allocation6], 3520  }
  0x48   :  { %3351 = vsyncadd [#allocation6], 4294963776 }
  0x49   :  { %3352 = dma.done.wait [#allocation9], 19456  }
  0x4a   :  { %3353 = vsyncadd [#allocation9], 4294947840  ;;  %v3364_v0 = vmov 0   ;;  %v3365_v1 = vmov 2   ;;  %vm237_vm0 = vcmask 1040384   ;;  %vm233_vm1 = vcmask 138240  }
  0x4b   :  { %326 = vmatprep.mubr.bf16.mxu0 %v3364_v0  ;;  %367 = vmatprep.mubr.bf16.mxu1 %v3364_v0  ;;  %v3040_v2 = vld [vmem:[#allocation7 + $0x4] ss:$72 sps:$4 sm:$0xff]   ;;  %v3455_v4 = vsel %vm237_vm0, 65535, %v3364_v0  ;;  %v3044_v5 = vld [vmem:[#allocation7] ss:$72 sps:$4 sm:$0xff]   ;;  %v3366_v56 = vmov 3  }
  0x4c   :  { %3024 = vset.pattern.permute.xlu1 %v3365_v1  ;;  %3022 = vset.pattern.permute.xlu0 %v3364_v0  ;;  %v3042_v3 = vld [vmem:[#allocation7 + $0xc] ss:$72 sps:$4 sm:$0xff]   ;;  %v3045_v6 = vld [vmem:[#allocation7 + $0x8] ss:$72 sps:$4 sm:$0xff]   ;;  %v90_v9 = vld [vmem:[#allocation7 + $0x98] sm:$0x11] }
  0x4d   :  { %294 = vmatprep.subr.bf16.mxu0 %v3040_v2  ;;  %v89_v7 = vld [vmem:[#allocation7 + $0x90] sm:$0x11]  ;;  %335 = vmatprep.subr.bf16.mxu1 %v3042_v3  ;;  %v2577_v11 = vcombine.high %v90_v9, %v90_v9  ;;  %v2576_v12 = vcombine.low %v90_v9, %v90_v9  ;;  %v3055_v18 = vld [vmem:[#allocation7 + $0x1c] ss:$72 sps:$4 sm:$0xff]   ;;  %v92_v20 = vld [vmem:[#allocation7 + $0xa8] sm:$0x11] }
  0x4e   :  { %v2575_v8 = vcombine.high %v89_v7, %v89_v7  ;;  %v2574_v10 = vcombine.low %v89_v7, %v89_v7  ;;  %295 = vmatpush1.bf16.msra.mxu0 %v3044_v5  ;;  %336 = vmatpush1.bf16.msra.mxu1 %v3045_v6  ;;  %v3052_v15 = vld [vmem:[#allocation7 + $0x14] ss:$72 sps:$4 sm:$0xff]   ;;  %v91_v19 = vld [vmem:[#allocation7 + $0xa0] sm:$0x11]  ;;  %v3461_v21 = vld [vmem:[#allocation2] sm:$0xf]  ;;  %v2581_v23 = vcombine.high %v92_v20, %v92_v20 }
  0x4f   :  { %v250_v16 = vand.u32 %v2577_v11, %v3455_v4  ;;  %v247_v17 = vand.u32 %v2576_v12, %v3455_v4  ;;  %v2579_v22 = vcombine.high %v91_v19, %v91_v19  ;;  %v3050_v24 = vld [vmem:[#allocation7 + $0x10] ss:$72 sps:$4 sm:$0xff]   ;;  %v2578_v25 = vcombine.low %v91_v19, %v91_v19  ;;  %v3062_v34 = vld [vmem:[#allocation7 + $0x24] ss:$72 sps:$4 sm:$0xff]   ;;  %v3060_v36 = vld [vmem:[#allocation7 + $0x20] ss:$72 sps:$4 sm:$0xff]  }
  0x50   :  { %v244_v13 = vand.u32 %v2575_v8, %v3455_v4  ;;  %v241_v14 = vand.u32 %v2574_v10, %v3455_v4  ;;  %v3053_v26 = vld [vmem:[#allocation7 + $0x18] ss:$72 sps:$4 sm:$0xff]   ;;  %v2580_v28 = vcombine.low %v92_v20, %v92_v20  ;;  %v262_v29 = vand.u32 %v2581_v23, %v3455_v4  ;;  %v93_v30 = vld [vmem:[#allocation7 + $0xb0] sm:$0x11]  ;;  %v3473_v40 = vld [vmem:[#allocation5] sm:$0xf] }
  0x51   :  { %337 = vmatprep.subr.bf16.mxu1 %v250_v16  ;;  %v256_v27 = vand.u32 %v2579_v22, %v3455_v4  ;;  %v94_v31 = vld [vmem:[#allocation7 + $0xb8] sm:$0x11]  ;;  %v253_v32 = vand.u32 %v2578_v25, %v3455_v4  ;;  %v2583_v35 = vcombine.high %v93_v30, %v93_v30  ;;  %v3065_v37 = vld [vmem:[#allocation7 + $0x2c] ss:$72 sps:$4 sm:$0xff]   ;;  %v3063_v39 = vld [vmem:[#allocation7 + $0x28] ss:$72 sps:$4 sm:$0xff]   ;;  %v2582_v41 = vcombine.low %v93_v30, %v93_v30 }
  0x52   :  { %296 = vmatprep.subr.bf16.mxu0 %v244_v13  ;;  %338 = vmatpush1.bf16.msra.mxu1 %v247_v17  ;;  %v259_v33 = vand.u32 %v2580_v28, %v3455_v4  ;;  %v2585_v38 = vcombine.high %v94_v31, %v94_v31  ;;  %v95_v42 = vld [vmem:[#allocation7 + $0xc0] sm:$0x11]  ;;  %v2584_v44 = vcombine.low %v94_v31, %v94_v31  ;;  %v96_v45 = vld [vmem:[#allocation7 + $0xc8] sm:$0x11]  ;;  %v3477_v46 = vunpack.c.l.bf16 %v3473_v40  ;;  %v3072_v48 = vld [vmem:[#allocation7 + $0x34] ss:$72 sps:$4 sm:$0xff]  }
  0x53   :  { %297 = vmatpush1.bf16.msra.mxu0 %v241_v14  ;;  %417 = vmatprep.subr.bf16.mxu1 %v3055_v18  ;;  %v268_v43 = vand.u32 %v2583_v35, %v3455_v4  ;;  %v265_v49 = vand.u32 %v2582_v41, %v3455_v4  ;;  %v3075_v50 = vld [vmem:[#allocation7 + $0x3c] ss:$72 sps:$4 sm:$0xff]   ;;  %v2587_v52 = vcombine.high %v95_v42, %v95_v42  ;;  %v3070_v53 = vld [vmem:[#allocation7 + $0x30] ss:$72 sps:$4 sm:$0xff]   ;;  %v3080_v5 = vld [vmem:[#allocation7 + $0x40] ss:$72 sps:$4 sm:$0xff]  }
  0x54   :  { %376 = vmatprep.subr.bf16.mxu0 %v3052_v15  ;;  %v274_v47 = vand.u32 %v2585_v38, %v3455_v4  ;;  %681 = vperm.xlu1 %3024, %v3477_v46   ;;  %v271_v51 = vand.u32 %v2584_v44, %v3455_v4  ;;  %v2589_v54 = vcombine.high %v96_v45, %v96_v45  ;;  %v3073_v55 = vld [vmem:[#allocation7 + $0x38] ss:$72 sps:$4 sm:$0xff]   ;;  %v97_v58 = vld [vmem:[#allocation7 + $0xd0] sm:$0x11]  ;;  %v3082_v62 = vld [vmem:[#allocation7 + $0x44] ss:$72 sps:$4 sm:$0xff]  }
  0x55   :  { %2593 = vmatmul.mubr.msk.bf16.vlgmr.msra.gmra.mrb[0].mxu1 %vm233_vm1, %v3461_v21  ;;  %v2586_v57 = vcombine.low %v95_v42, %v95_v42  ;;  %v280_v59 = vand.u32 %v2587_v52, %v3455_v4  ;;  %v2588_v60 = vcombine.low %v96_v45, %v96_v45  ;;  %667 = vperm.xlu0 %3022, %v3477_v46   ;;  %v3367_v6 = vmov 4   ;;  %v3087_v14 = vld [vmem:[#allocation8] sm:$0xff]   ;;  %v3089_v16 = vld [vmem:[#allocation8 + $0x48] sm:$0xff]   ;;  %v3093_v20 = vld [vmem:[#allocation8 + $0x50] sm:$0xff]   ;;  %s3376_s3 = smov [#allocation10]  }
  0x56   :  { %2592 = vmatmul.mubr.msk.bf16.vlgmr.msra.gmra.mrb[0].mxu0 %vm233_vm1, %v3461_v21  ;;  %418 = vmatpush1.bf16.msra.mxu1 %v3053_v26  ;;  %v286_v61 = vand.u32 %v2589_v54, %v3455_v4  ;;  %v2591_v3 = vcombine.high %v97_v58, %v97_v58  ;;  %v2590_v7 = vcombine.low %v97_v58, %v97_v58  ;;  %v3368_v9 = vmov 1   ;;  %v3088_v15 = vld [vmem:[#allocation8 + $0x80] sm:$0xff]   ;;  %v3090_v17 = vld [vmem:[#allocation8 + $0xc8] sm:$0xff]   ;;  %v3095_v22 = vld [vmem:[#allocation8 + $0x10] sm:$0xff]   ;;  %s2545_s11 = sshll.u32 %s3376_s3, 4  ;;  %s2546_s11 = int_to_ptr.vmem [resolvable:$true] %s2545_s11 }
  0x57   :  { %377 = vmatpush1.bf16.msra.mxu0 %v3050_v24  ;;  %419 = vmatprep.subr.bf16.mxu1 %v262_v29  ;;  %v277_v63 = vand.u32 %v2586_v57, %v3455_v4  ;;  %v283_v2 = vand.u32 %v2588_v60, %v3455_v4  ;;  %v3369_v11 = vmov 6   ;;  %v3370_v12 = vmov 5   ;;  %v3091_v18 = vld [vmem:[#allocation8 + $0x8] sm:$0xff]   ;;  %v3096_v23 = vld [vmem:[#allocation8 + $0x90] sm:$0xff]   ;;  %v3097_v24 = vld [vmem:[#allocation8 + $0x58] sm:$0xff]   ;;  %s3326_s12 = scalar_lea.vmem %s2546_s11, 128  ;;  %p3331_p5 = scmp.lt.s32.totalorder %s2546_s11, %s2546_s11 }
  0x58   :  { %378 = vmatprep.subr.bf16.mxu0 %v256_v27  ;;  %408 = vmatprep.mubr.bf16.mxu0 %v3364_v0  ;;  %v292_v8 = vand.u32 %v2591_v3, %v3455_v4  ;;  %v289_v10 = vand.u32 %v2590_v7, %v3455_v4  ;;  %v3371_v13 = vmov 7   ;;  %v3372_v4 = vmov 8   ;;  %v3092_v19 = vld [vmem:[#allocation8 + $0x88] sm:$0xff]   ;;  %v3098_v25 = vld [vmem:[#allocation8 + $0xd8] sm:$0xff]   ;;  %v3101_v28 = vld [vmem:[#allocation8 + $0x60] sm:$0xff]   ;;  %p3327_p4 = scmp.ne.s32.totalorder %s2546_s11, %s3326_s12  ;;  %p3332_p6 = scmp.lt.s32.totalorder %s3326_s12, %s3326_s12 }
  0x59   :  { %449 = vmatprep.mubr.bf16.mxu1 %v3364_v0  ;;  %3025 = vset.pattern.permute.xlu1 %v3366_v56  ;;  %v3099_v26 = vld [vmem:[#allocation8 + $0x18] sm:$0xff]   ;;  %v3102_v29 = vld [vmem:[#allocation8 + $0xe0] sm:$0xff]   ;;  %v3108_v35 = vld [vmem:[#allocation8 + $0xa8] sm:$0xff]   ;;  %vm740_vm2 = vcmask 72704   ;;  %vm3375_vm3 = vmmov 0  }
  0x5a   :  { %420 = vmatpush1.bf16.msra.mxu1 %v259_v33  ;;  %689 = vperm.xlu1 %3025, %v3477_v46   ;;  %v3100_v27 = vld [vmem:[#allocation8 + $0x98] sm:$0xff]   ;;  %v3103_v30 = vld [vmem:[#allocation8 + $0x20] sm:$0xff]   ;;  %v3106_v33 = vld [vmem:[#allocation8 + $0xe8] sm:$0xff]   ;;  %p3333_p7 = por %p3332_p6, %p3331_p5 }
  0x5b   :  { %379 = vmatpush1.bf16.msra.mxu0 %v253_v32  ;;  %499 = vmatprep.subr.bf16.mxu1 %v3065_v37  ;;  %v3104_v31 = vld [vmem:[#allocation8 + $0xa0] sm:$0xff]   ;;  %v3105_v32 = vld [vmem:[#allocation8 + $0x68] sm:$0xff]   ;;  %v3110_v37 = vld [vmem:[#allocation8 + $0xf0] sm:$0xff]  }
  0x5c   :  { %458 = vmatprep.subr.bf16.mxu0 %v3062_v34  ;;  %3023 = vset.pattern.permute.xlu0 %v3368_v9  ;;  %v3107_v34 = vld [vmem:[#allocation8 + $0x28] sm:$0xff]   ;;  %v3111_v38 = vld [vmem:[#allocation8 + $0x30] sm:$0xff]   ;;  %v3114_v41 = vld [vmem:[#allocation8 + $0xf8] sm:$0xff]   ;;  %p3334_p8 = pnand %p3333_p7, %p3327_p4 }
  0x5d   :  { %2595 = vmatmul.mubr.msk.bf16.vlgmr.msra.gmra.mrb[4].mxu1 %vm233_vm1, %v3461_v21  ;;  %673 = vperm.xlu0 %3023, %v3477_v46   ;;  %v3115_v42 = vld [vmem:[#allocation8 + $0x38] sm:$0xff]   ;;  %v3117_v44 = vld [vmem:[#allocation8 + $0x140] sm:$0xff]  }
  0x5e   :  { %2594 = vmatmul.mubr.msk.bf16.vlgmr.msra.gmra.mrb[4].mxu0 %vm233_vm1, %v3461_v21  ;;  %500 = vmatpush1.bf16.msra.mxu1 %v3063_v39  ;;  %v3112_v39 = vld [vmem:[#allocation8 + $0xb0] sm:$0xff]   ;;  %v3118_v45 = vld [vmem:[#allocation8 + $0x1c0] sm:$0xff]  }
  0x5f   :  { %459 = vmatpush1.bf16.msra.mxu0 %v3060_v36  ;;  %501 = vmatprep.subr.bf16.mxu1 %v274_v47  ;;  %v3109_v36 = vld [vmem:[#allocation8 + $0x70] sm:$0xff]  }
  0x60   :  { %460 = vmatprep.subr.bf16.mxu0 %v268_v43  ;;  %490 = vmatprep.mubr.bf16.mxu0 %v3364_v0  ;;  %v3116_v43 = vld [vmem:[#allocation8 + $0xb8] sm:$0xff]  }
  0x61   :  { %531 = vmatprep.mubr.bf16.mxu1 %v3364_v0  ;;  %3026 = vset.pattern.permute.xlu1 %v3367_v6 }
  0x62   :  { %502 = vmatpush1.bf16.msra.mxu1 %v271_v51  ;;  %697 = vperm.xlu1 %3026, %v3477_v46  }
  0x63   :  { %461 = vmatpush1.bf16.msra.mxu0 %v265_v49  ;;  %581 = vmatprep.subr.bf16.mxu1 %v3075_v50 }
  0x64   :  { %540 = vmatprep.subr.bf16.mxu0 %v3072_v48  ;;  %3027 = vset.pattern.permute.xlu0 %v3370_v12 }
  0x65   :  { %2597 = vmatmul.mubr.msk.bf16.vlgmr.msra.gmra.mrb[8].mxu1 %vm233_vm1, %v3461_v21  ;;  %705 = vperm.xlu0 %3027, %v3477_v46  }
  0x66   :  { %2596 = vmatmul.mubr.msk.bf16.vlgmr.msra.gmra.mrb[8].mxu0 %vm233_vm1, %v3461_v21  ;;  %582 = vmatpush1.bf16.msra.mxu1 %v3073_v55 }
  0x67   :  { %541 = vmatpush1.bf16.msra.mxu0 %v3070_v53  ;;  %583 = vmatprep.subr.bf16.mxu1 %v286_v61 }
  0x68   :  { %542 = vmatprep.subr.bf16.mxu0 %v280_v59  ;;  %572 = vmatprep.mubr.bf16.mxu0 %v3364_v0 }
  0x69   :  { %613 = vmatprep.mubr.bf16.mxu1 %v3364_v0  ;;  %3028 = vset.pattern.permute.xlu1 %v3369_v11 }
  0x6a   :  { %584 = vmatpush1.bf16.msra.mxu1 %v283_v2  ;;  %713 = vperm.xlu1 %3028, %v3477_v46  }
  0x6b   :  { %543 = vmatpush1.bf16.msra.mxu0 %v277_v63  ;;  %3030 = vset.pattern.permute.xlu0 %v3372_v4 }
  0x6c   :  { %622 = vmatprep.subr.bf16.mxu0 %v3082_v62  ;;  %729 = vperm.xlu0 %3030, %v3477_v46  }
  0x6d   :  { %2599 = vmatmul.mubr.msk.bf16.vlgmr.msra.gmra.mrb[12].mxu1 %vm233_vm1, %v3461_v21 }
  0x6e   :  { %2598 = vmatmul.mubr.msk.bf16.vlgmr.msra.gmra.mrb[12].mxu0 %vm233_vm1, %v3461_v21  ;;  %3029 = vset.pattern.permute.xlu1 %v3371_v13 }
  0x6f   :  { %623 = vmatpush1.bf16.msra.mxu0 %v3080_v5  ;;  %654 = vmatprep.mubr.bf16.mxu0 %v3364_v0 }
  0x70   :  { %624 = vmatprep.subr.bf16.mxu0 %v292_v8  ;;  %721 = vperm.xlu1 %3029, %v3477_v46  }
  0x71   :  { %3033 = vset.pattern.permute.xlu0 %v3365_v1  ;;  %v3086_v1 = vld [vmem:[#allocation8 + $0xc0] sm:$0xff]  }
  0x72   :  { %776 = vperm.xlu0 %3033, %v3473_v40  }
  0x73   :  { %625 = vmatpush1.bf16.msra.mxu0 %v289_v10 }
  0x74   :  { %3031 = vset.pattern.permute.xlu1 %v3364_v0  ;;  %v3085_v0 = vld [vmem:[#allocation8 + $0x40] sm:$0xff]   ;;  %2796 = vmatprep.subr.bf16.mxu0 %v3086_v1 }
  0x75   :  { %746 = vperm.xlu1 %3031, %v3473_v40   ;;  %2774 = vmatprep.subr.bf16.mxu1 %v3085_v0 }
  0x76   :  { %2600 = vmatmul.mubr.msk.bf16.vlgmr.msra.gmra.mrb[16].mxu0 %vm233_vm1, %v3461_v21  ;;  %3036 = vset.pattern.permute.xlu0 %v3370_v12  ;;  %v3094_v21 = vld [vmem:[#allocation8 + $0xd0] sm:$0xff]  }
  0x77   :  { %812 = vperm.xlu0 %3036, %v3473_v40   ;;  %2775 = vmatpush3.bf16.msra.mxu1 %v3087_v14 }
  0x78   :  { %2797 = vmatpush3.bf16.msra.mxu0 %v3088_v15  ;;  %2776 = vmatprep.subr.bf16.mxu1 %v3089_v16 }
  0x79   :  { %3032 = vset.pattern.permute.xlu1 %v3368_v9  ;;  %2798 = vmatprep.subr.bf16.mxu0 %v3090_v17 }
  0x7a   :  { %764 = vperm.xlu1 %3032, %v3473_v40  }
  0x7b   :  { %3039 = vset.pattern.permute.xlu0 %v3372_v4  ;;  %2777 = vmatpush3.bf16.msra.mxu1 %v3091_v18 }
  0x7c   :  { %848 = vperm.xlu0 %3039, %v3473_v40   ;;  %2799 = vmatpush3.bf16.msra.mxu0 %v3092_v19 }
  0x7d   :  { %2778 = vmatprep.subr.bf16.mxu1 %v3093_v20  ;;  %2800 = vmatprep.subr.bf16.mxu0 %v3094_v21 }
  0x7e   :  { %3034 = vset.pattern.permute.xlu1 %v3366_v56 }
  0x7f   :  { %788 = vperm.xlu1 %3034, %v3473_v40   ;;  %2779 = vmatpush3.bf16.msra.mxu1 %v3095_v22 }
  0x80   :  { %2801 = vmatpush3.bf16.msra.mxu0 %v3096_v23  ;;  %2780 = vmatprep.subr.bf16.mxu1 %v3097_v24 }
  0x81   :  { %2802 = vmatprep.subr.bf16.mxu0 %v3098_v25 }
  0x83   :  { %3035 = vset.pattern.permute.xlu1 %v3367_v6  ;;  %2781 = vmatpush3.bf16.msra.mxu1 %v3099_v26 }
  0x84   :  { %800 = vperm.xlu1 %3035, %v3473_v40   ;;  %2803 = vmatpush3.bf16.msra.mxu0 %v3100_v27 }
  0x85   :  { %2782 = vmatprep.subr.bf16.mxu1 %v3101_v28  ;;  %2804 = vmatprep.subr.bf16.mxu0 %v3102_v29 }
  0x87   :  { %2783 = vmatpush3.bf16.msra.mxu1 %v3103_v30 }
  0x88   :  { %3037 = vset.pattern.permute.xlu1 %v3369_v11  ;;  %2805 = vmatpush3.bf16.msra.mxu0 %v3104_v31 }
  0x89   :  { %824 = vperm.xlu1 %3037, %v3473_v40   ;;  %2784 = vmatprep.subr.bf16.mxu1 %v3105_v32 }
  0x8a   :  { %2806 = vmatprep.subr.bf16.mxu0 %v3106_v33 }
  0x8b   :  { %2785 = vmatpush3.bf16.msra.mxu1 %v3107_v34 }
  0x8c   :  { %2807 = vmatpush3.bf16.msra.mxu0 %v3108_v35  ;;  %2786 = vmatprep.subr.bf16.mxu1 %v3109_v36 }
  0x8d   :  { %3038 = vset.pattern.permute.xlu1 %v3371_v13  ;;  %2808 = vmatprep.subr.bf16.mxu0 %v3110_v37 }
  0x8e   :  { %836 = vperm.xlu1 %3038, %v3473_v40   ;;  %v3113_v40 = vld [vmem:[#allocation8 + $0x78] sm:$0xff]  }
  0x8f   :  { %2787 = vmatpush3.bf16.msra.mxu1 %v3111_v38 }
  0x90   :  { %2809 = vmatpush3.bf16.msra.mxu0 %v3112_v39  ;;  %2788 = vmatprep.subr.bf16.mxu1 %v3113_v40 }
  0x91   :  { %2810 = vmatprep.subr.bf16.mxu0 %v3114_v41 }
  0x93   :  { %2789 = vmatpush3.bf16.msra.mxu1 %v3115_v42 }
  0x94   :  { %2811 = vmatpush3.bf16.msra.mxu0 %v3116_v43  ;;  %2818 = vmatprep.subr.bf16.mxu1 %v3117_v44 }
  0x95   :  { %2840 = vmatprep.subr.bf16.mxu0 %v3118_v45 }
  0xd3   :  { %v682_v46 = vpop.permute.xlu1 %681 }
  0xd4   :  { %v668_v50 = vpop.permute.xlu0 %667 }
  0xd9   :  { %v690_v47 = vpop.permute.xlu1 %689 }
  0xdc   :  { %v674_v52 = vpop.permute.xlu0 %673 }
  0xe1   :  { %v698_v48 = vpop.permute.xlu1 %697 }
  0xe4   :  { %v706_v7 = vpop.permute.xlu0 %705 }
  0xe9   :  { %v3529_v49 = vpop.permute.xlu1 %713 }
  0xeb   :  { %v730_v22 = vpop.permute.xlu0 %729 }
  0xef   :  { %v3531_v51 = vpop.permute.xlu1 %721 }
  0xf1   :  { %v777_v40 = vpop.permute.xlu0 %776 }
  0xf4   :  { %v3533_v54 = vpop.permute.xlu1 %746 }
  0xf9   :  { %v3535_v9 = vpop.permute.xlu1 %764 }
  0xfe   :  { %v3537_v24 = vpop.permute.xlu1 %788 }
 0x103   :  { %v3539_v41 = vpop.permute.xlu1 %800 }
 0x128   :  { %v369_v56 = vpop.f32.mrb[0].mxu1 }
 0x129   :  { %v328_v53 = vpop.f32.mrb[0].mxu0  ;;  %v676_v58 = vmul.f32 %v674_v52, %v369_v56  ;;  %v371_v60 = vpop.f32.mrb[1].mxu1 }
 0x12a   :  { %v670_v55 = vmul.f32 %v668_v50, %v328_v53  ;;  %v330_v57 = vpop.f32.mrb[1].mxu0  ;;  %v677_v62 = vmul.f32 %v674_v52, %v371_v60  ;;  %v373_v2 = vpop.f32.mrb[2].mxu1 }
 0x12b   :  { %v671_v59 = vmul.f32 %v668_v50, %v330_v57  ;;  %v332_v61 = vpop.f32.mrb[2].mxu0  ;;  %v374_v5 = vpop.f32.mrb[3].mxu1 }
 0x12c   :  { %v333_v63 = vpop.f32.mrb[3].mxu0  ;;  %v678_v3 = vadd.f32 %v676_v58, %v670_v55  ;;  %v825_v2 = vpop.permute.xlu1 %824 }
 0x12d   :  { %v679_v6 = vadd.f32 %v677_v62, %v671_v59  ;;  %v3545_v62 = vpop.permute.xlu0 %812 }
 0x130   :  { %v451_v12 = vpop.f32.mrb[4].mxu1 }
 0x131   :  { %v410_v8 = vpop.f32.mrb[4].mxu0  ;;  %v692_v0 = vmul.f32 %v690_v47, %v451_v12  ;;  %v453_v1 = vpop.f32.mrb[5].mxu1 }
 0x132   :  { %v684_v10 = vmul.f32 %v682_v46, %v410_v8  ;;  %v412_v11 = vpop.f32.mrb[5].mxu0  ;;  %v693_v16 = vmul.f32 %v690_v47, %v453_v1  ;;  %v455_v17 = vpop.f32.mrb[6].mxu1 }
 0x133   :  { %v685_v13 = vmul.f32 %v682_v46, %v412_v11  ;;  %v414_v4 = vpop.f32.mrb[6].mxu0  ;;  %v456_v19 = vpop.f32.mrb[7].mxu1  ;;  %v3373_v46 = vmov 839922192  }
 0x134   :  { %v686_v14 = vadd.f32 %v684_v10, %v678_v3  ;;  %v415_v15 = vpop.f32.mrb[7].mxu0  ;;  %v750_v47 = vunpack.c.l.s4 %v3373_v46  ;;  %v3129_v46 = vld [vmem:[#allocation8 + $0x158] sm:$0xff]  }
 0x135   :  { %v687_v18 = vadd.f32 %v685_v13, %v679_v6  ;;  %v849_v13 = vpop.permute.xlu0 %848 }
 0x136   :  { %v694_v20 = vadd.f32 %v692_v0, %v686_v14  ;;  %v751_v3 = vunpack.c.0.s8 %v750_v47  ;;  %v837_v0 = vpop.permute.xlu1 %836  ;;  %v3130_v47 = vld [vmem:[#allocation8 + $0x1d8] sm:$0xff]  }
 0x137   :  { %v695_v21 = vadd.f32 %v693_v16, %v687_v18 }
 0x138   :  { %v533_v27 = vpop.f32.mrb[8].mxu1 }
 0x139   :  { %v492_v23 = vpop.f32.mrb[8].mxu0  ;;  %v708_v30 = vmul.f32 %v706_v7, %v533_v27  ;;  %v535_v31 = vpop.f32.mrb[9].mxu1 }
 0x13a   :  { %v700_v25 = vmul.f32 %v698_v48, %v492_v23  ;;  %v494_v26 = vpop.f32.mrb[9].mxu0  ;;  %v709_v34 = vmul.f32 %v706_v7, %v535_v31  ;;  %v537_v35 = vpop.f32.mrb[10].mxu1 }
 0x13b   :  { %v701_v28 = vmul.f32 %v698_v48, %v494_v26  ;;  %v496_v29 = vpop.f32.mrb[10].mxu0  ;;  %v538_v37 = vpop.f32.mrb[11].mxu1  ;;  %v752_v48 = vlaneseq  ;;  %v3122_v35 = vld [vmem:[#allocation8 + $0x1c8] sm:$0xff]  }
 0x13c   :  { %v702_v32 = vadd.f32 %v700_v25, %v694_v20  ;;  %v497_v33 = vpop.f32.mrb[11].mxu0 }
 0x13d   :  { %v703_v36 = vadd.f32 %v701_v28, %v695_v21  ;;  %v753_v5 = vshrl.u32 %v752_v48, 7  ;;  %v3120_v33 = vld [vmem:[#allocation8 + $0x180] sm:$0xff]   ;;  %v3131_v48 = vld [vmem:[#allocation8 + $0x118] sm:$0xff]  }
 0x13e   :  { %v710_v38 = vadd.f32 %v708_v30, %v702_v32  ;;  %v3119_v32 = vld [vmem:[#allocation8 + $0x100] sm:$0xff]  }
 0x13f   :  { %v711_v39 = vadd.f32 %v709_v34, %v703_v36  ;;  %v3547_v10 = vsub.s32 %v751_v3, %v753_v5  ;;  %v3121_v34 = vld [vmem:[#allocation8 + $0x148] sm:$0xff]   ;;  %v3237_v36 = vld [vmem:[#allocation5] sm:$0xf]  ;;  %v3144_v3 = vld [vmem:[#allocation8 + $0x1b0] sm:$0xff]  }
 0x140   :  { %v615_v45 = vpop.f32.mrb[12].mxu1  ;;  %v3145_v5 = vld [vmem:[#allocation8 + $0x178] sm:$0xff]  }
 0x141   :  { %v574_v42 = vpop.f32.mrb[12].mxu0  ;;  %v724_v53 = vmul.f32 %v3531_v51, %v615_v45  ;;  %v617_v55 = vpop.f32.mrb[13].mxu1  ;;  %v833_v16 = vrot.slane %v825_v2, %v3547_v10  ;;  %v845_v17 = vrot.slane %v837_v0, %v3547_v10  ;;  %v857_v18 = vrot.slane %v849_v13, %v3547_v10  ;;  %v3128_v45 = vld [vmem:[#allocation8 + $0x190] sm:$0xff]   ;;  %v3150_v13 = vld [vmem:[#allocation8 + $0x2c0] sm:$0xff]  }
 0x142   :  { %v716_v43 = vmul.f32 %v3529_v49, %v574_v42  ;;  %v576_v44 = vpop.f32.mrb[13].mxu0  ;;  %v725_v58 = vmul.f32 %v3531_v51, %v617_v55  ;;  %v619_v59 = vpop.f32.mrb[14].mxu1  ;;  %v755_v19 = vrot.slane %v3533_v54, %v3547_v10  ;;  %v773_v20 = vrot.slane %v3535_v9, %v3547_v10  ;;  %v3125_v42 = vld [vmem:[#allocation8 + $0x150] sm:$0xff]   ;;  %v3135_v55 = vld [vmem:[#allocation8 + $0x120] sm:$0xff]  }
 0x143   :  { %v717_v50 = vmul.f32 %v3529_v49, %v576_v44  ;;  %v578_v52 = vpop.f32.mrb[14].mxu0  ;;  %v620_v61 = vpop.f32.mrb[15].mxu1  ;;  %v797_v21 = vrot.slane %v3537_v24, %v3547_v10  ;;  %v3127_v44 = vld [vmem:[#allocation8 + $0x110] sm:$0xff]   ;;  %v3139_v59 = vld [vmem:[#allocation8 + $0x128] sm:$0xff]   ;;  %v3152_v0 = vld [vmem:[#allocation8 + $0x280] sm:$0xff]  }
 0x144   :  { %v718_v56 = vadd.f32 %v716_v43, %v710_v38  ;;  %v579_v57 = vpop.f32.mrb[15].mxu0  ;;  %v3126_v43 = vld [vmem:[#allocation8 + $0x1d0] sm:$0xff]   ;;  %v3133_v52 = vld [vmem:[#allocation8 + $0x160] sm:$0xff]  }
 0x145   :  { %v719_v60 = vadd.f32 %v717_v50, %v711_v39  ;;  %v3123_v39 = vld [vmem:[#allocation8 + $0x108] sm:$0xff]   ;;  %v3132_v50 = vld [vmem:[#allocation8 + $0x198] sm:$0xff]   ;;  %v3141_v61 = vld [vmem:[#allocation8 + $0x170] sm:$0xff]  }
 0x146   :  { %v726_v63 = vadd.f32 %v724_v53, %v718_v56  ;;  %v3134_v53 = vld [vmem:[#allocation8 + $0x1e0] sm:$0xff]   ;;  %v3137_v57 = vld [vmem:[#allocation8 + $0x168] sm:$0xff]   ;;  %v3143_v2 = vld [vmem:[#allocation8 + $0x130] sm:$0xff]  }
 0x147   :  { %v727_v6 = vadd.f32 %v725_v58, %v719_v60  ;;  %v3136_v56 = vld [vmem:[#allocation8 + $0x1a0] sm:$0xff]   ;;  %v3138_v58 = vld [vmem:[#allocation8 + $0x1e8] sm:$0xff]  }
 0x148   :  { %v3140_v60 = vld [vmem:[#allocation8 + $0x1a8] sm:$0xff]  }
 0x149   :  { %v656_v7 = vpop.f32.mrb[16].mxu0 }
 0x14a   :  { %v732_v49 = vmul.f32 %v730_v22, %v656_v7  ;;  %v658_v8 = vpop.f32.mrb[17].mxu0  ;;  %v809_v7 = vrot.slane %v3539_v41, %v3547_v10  ;;  %v3151_v41 = vld [vmem:[#allocation8 + $0x200] sm:$0xff]  }
 0x14b   :  { %v733_v11 = vmul.f32 %v730_v22, %v658_v8  ;;  %v660_v12 = vpop.f32.mrb[18].mxu0  ;;  %v785_v22 = vrot.slane %v777_v40, %v3547_v10  ;;  %v3124_v40 = vld [vmem:[#allocation8 + $0x188] sm:$0xff]   ;;  %v3147_v8 = vld [vmem:[#allocation8 + $0x138] sm:$0xff]  }
 0x14c   :  { %v734_v4 = vadd.f32 %v732_v49, %v726_v63  ;;  %v661_v51 = vpop.f32.mrb[19].mxu0  ;;  %v3142_v63 = vld [vmem:[#allocation8 + $0x1f0] sm:$0xff]   ;;  %v821_v49 = vrot.slane %v3545_v62, %v3547_v10  ;;  %v3149_v12 = vld [vmem:[#allocation8 + $0x240] sm:$0xff]  }
 0x14d   :  { %v735_v1 = vadd.f32 %v733_v11, %v727_v6  ;;  %v3146_v6 = vld [vmem:[#allocation8 + $0x1f8] sm:$0xff]  }
 0x14e   :  { %v736_v14 = vmax.f32 %v734_v4, 0.0  ;;  %v3148_v11 = vld [vmem:[#allocation8 + $0x1b8] sm:$0xff]  }
 0x14f   :  { %v737_v15 = vmax.f32 %v735_v1, 0.0 }
 0x151   :  { %v3559_v23 = vpack.c.bf16 %v737_v15, %v736_v14  ;;  %v3153_v14 = vld [vmem:[#allocation8 + $0x248] sm:$0xff]  }
 0x152   :  { %v3154_v15 = vld [vmem:[#allocation8 + $0x2c8] sm:$0xff]  }
 0x153   :  { %v3562_v25 = vmul.bf16 %v3559_v23, %v833_v16  ;;  %v3565_v26 = vmul.bf16 %v3559_v23, %v845_v17  ;;  %v3568_v27 = vmul.bf16 %v3559_v23, %v857_v18  ;;  %v762_v54 = vmul.bf16 %v3559_v23, %v755_v19  ;;  %v3155_v17 = vld [vmem:[#allocation8 + $0x208] sm:$0xff]   ;;  %v3157_v19 = vld [vmem:[#allocation8 + $0x250] sm:$0xff]  }
 0x154   :  { %v3572_v9 = vmul.bf16 %v3559_v23, %v773_v20  ;;  %v3575_v24 = vmul.bf16 %v3559_v23, %v785_v22  ;;  %v3578_v28 = vmul.bf16 %v3559_v23, %v797_v21  ;;  %v3591_v4 = vmul.bf16 %v3559_v23, %v809_v7  ;;  %v3156_v18 = vld [vmem:[#allocation8 + $0x288] sm:$0xff]   ;;  %v3158_v20 = vld [vmem:[#allocation8 + $0x2d0] sm:$0xff]   ;;  %v3196_v7 = vld [vmem:[#allocation8 + $0x398] sm:$0xff]  }
 0x155   :  { %v2602_v29 = vcombine.low %v762_v54, %v762_v54  ;;  %v2603_v31 = vcombine.high %v762_v54, %v762_v54  ;;  %v3594_v51 = vmul.bf16 %v3559_v23, %v821_v49  ;;  %v3159_v21 = vld [vmem:[#allocation8 + $0x210] sm:$0xff]   ;;  %v3161_v23 = vld [vmem:[#allocation8 + $0x258] sm:$0xff]   ;;  %v3197_v49 = vld [vmem:[#allocation8 + $0x360] sm:$0xff]  }
 0x156   :  { %v2604_v30 = vcombine.low %v3572_v9, %v3572_v9  ;;  %v2606_v37 = vcombine.low %v3575_v24, %v3575_v24  ;;  %v2608_v38 = vcombine.low %v3578_v28, %v3578_v28  ;;  %v2605_v62 = vcombine.high %v3572_v9, %v3572_v9  ;;  %v3160_v22 = vld [vmem:[#allocation8 + $0x290] sm:$0xff]   ;;  %v3162_v54 = vld [vmem:[#allocation8 + $0x2d8] sm:$0xff]  }
 0x157   :  { %2170 = vmatprep.mubr.bf16.mxu1 %v2602_v29  ;;  %v2607_v10 = vcombine.high %v3575_v24, %v3575_v24  ;;  %v2610_v1 = vcombine.low %v3591_v4, %v3591_v4  ;;  %v2612_v16 = vcombine.low %v3594_v51, %v3594_v51  ;;  %v3163_v9 = vld [vmem:[#allocation8 + $0x218] sm:$0xff]   ;;  %v3165_v29 = vld [vmem:[#allocation8 + $0x260] sm:$0xff]  }
 0x158   :  { %2210 = vmatprep.mubr.bf16.mxu0 %v2604_v30  ;;  %2772 = vmatmul.mubr.msk.bf16.vlgmr.msra.gmra.mrb[16].mxu1 %vm740_vm2, %v3237_v36  ;;  %v3164_v24 = vld [vmem:[#allocation8 + $0x298] sm:$0xff]   ;;  %v3166_v30 = vld [vmem:[#allocation8 + $0x2e0] sm:$0xff]   ;;  %v3172_v36 = vld [vmem:[#allocation8 + $0x2a8] sm:$0xff]  }
 0x159   :  { %2211 = vmatmul.mubr.bf16.vlgmr.msra.gmra.mrb[20].mxu0 %v2603_v31  ;;  %2819 = vmatpush3.bf16.msra.mxu1 %v3119_v32  ;;  %v3167_v31 = vld [vmem:[#allocation8 + $0x220] sm:$0xff]  }
 0x15a   :  { %2841 = vmatpush3.bf16.msra.mxu0 %v3120_v33  ;;  %2250 = vmatprep.mubr.bf16.mxu1 %v2606_v37  ;;  %v3168_v32 = vld [vmem:[#allocation8 + $0x2a0] sm:$0xff]   ;;  %v3169_v33 = vld [vmem:[#allocation8 + $0x268] sm:$0xff]   ;;  %v3173_v37 = vld [vmem:[#allocation8 + $0x270] sm:$0xff]  }
 0x15b   :  { %2290 = vmatprep.mubr.bf16.mxu0 %v2608_v38  ;;  %2820 = vmatprep.subr.bf16.mxu1 %v3121_v34  ;;  %v3170_v34 = vld [vmem:[#allocation8 + $0x2e8] sm:$0xff]   ;;  %v3174_v38 = vld [vmem:[#allocation8 + $0x2f0] sm:$0xff]  }
 0x15c   :  { %2842 = vmatprep.subr.bf16.mxu0 %v3122_v35  ;;  %v3171_v35 = vld [vmem:[#allocation8 + $0x228] sm:$0xff]  }
 0x15d   :  { %2821 = vmatpush3.bf16.msra.mxu1 %v3123_v39  ;;  %v3175_v39 = vld [vmem:[#allocation8 + $0x230] sm:$0xff]  }
 0x15e   :  { %2843 = vmatpush3.bf16.msra.mxu0 %v3124_v40  ;;  %2822 = vmatprep.subr.bf16.mxu1 %v3125_v42  ;;  %v3176_v40 = vld [vmem:[#allocation8 + $0x2b0] sm:$0xff]   ;;  %v3177_v42 = vld [vmem:[#allocation8 + $0x278] sm:$0xff]  }
 0x15f   :  { %2844 = vmatprep.subr.bf16.mxu0 %v3126_v43  ;;  %v3178_v43 = vld [vmem:[#allocation8 + $0x2f8] sm:$0xff]  }
 0x161   :  { %2823 = vmatpush3.bf16.msra.mxu1 %v3127_v44  ;;  %v3179_v44 = vld [vmem:[#allocation8 + $0x238] sm:$0xff]  }
 0x162   :  { %2845 = vmatpush3.bf16.msra.mxu0 %v3128_v45  ;;  %2824 = vmatprep.subr.bf16.mxu1 %v3129_v46  ;;  %v3180_v45 = vld [vmem:[#allocation8 + $0x2b8] sm:$0xff]   ;;  %v3181_v46 = vld [vmem:[#allocation8 + $0x340] sm:$0xff]  }
 0x163   :  { %2846 = vmatprep.subr.bf16.mxu0 %v3130_v47  ;;  %v3182_v47 = vld [vmem:[#allocation8 + $0x3c0] sm:$0xff]  }
 0x165   :  { %2825 = vmatpush3.bf16.msra.mxu1 %v3131_v48  ;;  %v3183_v48 = vld [vmem:[#allocation8 + $0x300] sm:$0xff]  }
 0x166   :  { %2847 = vmatpush3.bf16.msra.mxu0 %v3132_v50  ;;  %2826 = vmatprep.subr.bf16.mxu1 %v3133_v52  ;;  %v2609_v50 = vcombine.high %v3578_v28, %v3578_v28  ;;  %v3184_v52 = vld [vmem:[#allocation8 + $0x380] sm:$0xff]   ;;  %v3188_v28 = vld [vmem:[#allocation8 + $0x388] sm:$0xff]  }
 0x167   :  { %2848 = vmatprep.subr.bf16.mxu0 %v3134_v53  ;;  %v2611_v53 = vcombine.high %v3591_v4, %v3591_v4  ;;  %v3202_v4 = vld [vmem:[#allocation8 + $0x3e8] sm:$0xff]  }
 0x169   :  { %2827 = vmatpush3.bf16.msra.mxu1 %v3135_v55  ;;  %v3185_v55 = vld [vmem:[#allocation8 + $0x348] sm:$0xff]  }
 0x16a   :  { %2849 = vmatpush3.bf16.msra.mxu0 %v3136_v56  ;;  %2828 = vmatprep.subr.bf16.mxu1 %v3137_v57  ;;  %v2614_v56 = vcombine.low %v3562_v25, %v3562_v25  ;;  %v3186_v57 = vld [vmem:[#allocation8 + $0x3c8] sm:$0xff]  }
 0x16b   :  { %2850 = vmatprep.subr.bf16.mxu0 %v3138_v58  ;;  %v2616_v58 = vcombine.low %v3565_v26, %v3565_v26 }
 0x16d   :  { %2829 = vmatpush3.bf16.msra.mxu1 %v3139_v59  ;;  %v3187_v59 = vld [vmem:[#allocation8 + $0x308] sm:$0xff]  }
 0x16e   :  { %2851 = vmatpush3.bf16.msra.mxu0 %v3140_v60  ;;  %2830 = vmatprep.subr.bf16.mxu1 %v3141_v61  ;;  %v3189_v60 = vld [vmem:[#allocation8 + $0x350] sm:$0xff]  }
 0x16f   :  { %2852 = vmatprep.subr.bf16.mxu0 %v3142_v63  ;;  %v3190_v61 = vld [vmem:[#allocation8 + $0x3d0] sm:$0xff]  }
 0x170   :  { %v3191_v63 = vld [vmem:[#allocation8 + $0x310] sm:$0xff]  }
 0x171   :  { %2831 = vmatpush3.bf16.msra.mxu1 %v3143_v2  ;;  %v3192_v2 = vld [vmem:[#allocation8 + $0x390] sm:$0xff]  }
 0x172   :  { %2853 = vmatpush3.bf16.msra.mxu0 %v3144_v3  ;;  %2832 = vmatprep.subr.bf16.mxu1 %v3145_v5  ;;  %v3193_v3 = vld [vmem:[#allocation8 + $0x358] sm:$0xff]  }
 0x173   :  { %2854 = vmatprep.subr.bf16.mxu0 %v3146_v6  ;;  %v3194_v5 = vld [vmem:[#allocation8 + $0x3d8] sm:$0xff]  }
 0x174   :  { %v3195_v6 = vld [vmem:[#allocation8 + $0x318] sm:$0xff]  }
 0x175   :  { %2833 = vmatpush3.bf16.msra.mxu1 %v3147_v8  ;;  %v3198_v8 = vld [vmem:[#allocation8 + $0x3e0] sm:$0xff]  }
 0x176   :  { %2855 = vmatpush3.bf16.msra.mxu0 %v3148_v11  ;;  %2862 = vmatprep.subr.bf16.mxu1 %v3149_v12  ;;  %v3199_v11 = vld [vmem:[#allocation8 + $0x320] sm:$0xff]  }
 0x177   :  { %2884 = vmatprep.subr.bf16.mxu0 %v3150_v13  ;;  %v3200_v12 = vld [vmem:[#allocation8 + $0x3a0] sm:$0xff]   ;;  %v3201_v13 = vld [vmem:[#allocation8 + $0x368] sm:$0xff]  }
 0x178   :  { %2251 = vmatmul.mubr.bf16.vlgmr.msra.gmra.mrb[20].mxu1 %v2605_v62  ;;  %v3204_v62 = vld [vmem:[#allocation8 + $0x3a8] sm:$0xff]  }
 0x179   :  { %2291 = vmatmul.mubr.bf16.vlgmr.msra.gmra.mrb[24].mxu0 %v2607_v10  ;;  %2863 = vmatpush3.bf16.msra.mxu1 %v3151_v41  ;;  %v3203_v41 = vld [vmem:[#allocation8 + $0x328] sm:$0xff]   ;;  %v3205_v10 = vld [vmem:[#allocation8 + $0x370] sm:$0xff]  }
 0x17a   :  { %2330 = vmatprep.mubr.bf16.mxu1 %v2610_v1  ;;  %2885 = vmatpush3.bf16.msra.mxu0 %v3152_v0  ;;  %v3206_v0 = vld [vmem:[#allocation8 + $0x3f0] sm:$0xff]  }
 0x17b   :  { %2370 = vmatprep.mubr.bf16.mxu0 %v2612_v16  ;;  %2864 = vmatprep.subr.bf16.mxu1 %v3153_v14  ;;  %v3207_v1 = vld [vmem:[#allocation8 + $0x330] sm:$0xff]   ;;  %v3210_v16 = vld [vmem:[#allocation8 + $0x3f8] sm:$0xff]  }
 0x17c   :  { %2886 = vmatprep.subr.bf16.mxu0 %v3154_v15  ;;  %v3208_v14 = vld [vmem:[#allocation8 + $0x3b0] sm:$0xff]   ;;  %v3209_v15 = vld [vmem:[#allocation8 + $0x378] sm:$0xff]  }
 0x17d   :  { %2865 = vmatpush3.bf16.msra.mxu1 %v3155_v17  ;;  %v3211_v17 = vld [vmem:[#allocation8 + $0x338] sm:$0xff]  }
 0x17e   :  { %2887 = vmatpush3.bf16.msra.mxu0 %v3156_v18  ;;  %2866 = vmatprep.subr.bf16.mxu1 %v3157_v19  ;;  %v3212_v18 = vld [vmem:[#allocation8 + $0x3b8] sm:$0xff]   ;;  %v3213_v19 = vld [vmem:[#allocation8 + $0x440] sm:$0xff]  }
 0x17f   :  { %2888 = vmatprep.subr.bf16.mxu0 %v3158_v20  ;;  %v3214_v20 = vld [vmem:[#allocation8 + $0x400] sm:$0xff]  }
 0x181   :  { %2867 = vmatpush3.bf16.msra.mxu1 %v3159_v21  ;;  %v2613_v21 = vcombine.high %v3594_v51, %v3594_v51  ;;  %v3219_v51 = vld [vmem:[#allocation8 + $0x450] sm:$0xff]  }
 0x182   :  { %2889 = vmatpush3.bf16.msra.mxu0 %v3160_v22  ;;  %2868 = vmatprep.subr.bf16.mxu1 %v3161_v23  ;;  %v3215_v22 = vld [vmem:[#allocation8 + $0x480] sm:$0xff]   ;;  %v2615_v23 = vcombine.high %v3562_v25, %v3562_v25  ;;  %v3220_v25 = vld [vmem:[#allocation8 + $0x410] sm:$0xff]  }
 0x183   :  { %2890 = vmatprep.subr.bf16.mxu0 %v3162_v54  ;;  %v3374_v54 = vmov 0.0  }
 0x185   :  { %2869 = vmatpush3.bf16.msra.mxu1 %v3163_v9  ;;  %v3216_v9 = vld [vmem:[#allocation8 + $0x448] sm:$0xff]  }
 0x186   :  { %2891 = vmatpush3.bf16.msra.mxu0 %v3164_v24  ;;  %2870 = vmatprep.subr.bf16.mxu1 %v3165_v29  ;;  %v2618_v24 = vcombine.low %v3568_v27, %v3568_v27  ;;  %v3217_v29 = vld [vmem:[#allocation8 + $0x408] sm:$0xff]  }
 0x187   :  { %2892 = vmatprep.subr.bf16.mxu0 %v3166_v30  ;;  %v3218_v30 = vld [vmem:[#allocation8 + $0x488] sm:$0xff]  }
 0x189   :  { %2871 = vmatpush3.bf16.msra.mxu1 %v3167_v31  ;;  %v3221_v31 = vld [vmem:[#allocation8 + $0x490] sm:$0xff]  }
 0x18a   :  { %2893 = vmatpush3.bf16.msra.mxu0 %v3168_v32  ;;  %2872 = vmatprep.subr.bf16.mxu1 %v3169_v33  ;;  %v3222_v32 = vld [vmem:[#allocation8 + $0x458] sm:$0xff]  }
 0x18b   :  { %2894 = vmatprep.subr.bf16.mxu0 %v3170_v34  ;;  %v3223_v33 = vld [vmem:[#allocation8 + $0x418] sm:$0xff]  }
 0x18c   :  { %v3224_v34 = vld [vmem:[#allocation8 + $0x498] sm:$0xff]  }
 0x18d   :  { %2873 = vmatpush3.bf16.msra.mxu1 %v3171_v35  ;;  %v3225_v35 = vld [vmem:[#allocation8 + $0x460] sm:$0xff]  }
 0x18e   :  { %2895 = vmatpush3.bf16.msra.mxu0 %v3172_v36  ;;  %2874 = vmatprep.subr.bf16.mxu1 %v3173_v37  ;;  %v3226_v36 = vld [vmem:[#allocation8 + $0x420] sm:$0xff]  }
 0x18f   :  { %2896 = vmatprep.subr.bf16.mxu0 %v3174_v38  ;;  %v3227_v37 = vld [vmem:[#allocation8 + $0x4a0] sm:$0xff]   ;;  %v3228_v38 = vld [vmem:[#allocation8 + $0x468] sm:$0xff]  }
 0x191   :  { %2875 = vmatpush3.bf16.msra.mxu1 %v3175_v39  ;;  %v3229_v39 = vld [vmem:[#allocation8 + $0x428] sm:$0xff]  }
 0x192   :  { %2897 = vmatpush3.bf16.msra.mxu0 %v3176_v40  ;;  %2876 = vmatprep.subr.bf16.mxu1 %v3177_v42  ;;  %v3230_v40 = vld [vmem:[#allocation8 + $0x4a8] sm:$0xff]   ;;  %v3231_v42 = vld [vmem:[#allocation8 + $0x470] sm:$0xff]  }
 0x193   :  { %2898 = vmatprep.subr.bf16.mxu0 %v3178_v43  ;;  %v3232_v43 = vld [vmem:[#allocation8 + $0x430] sm:$0xff]  }
 0x195   :  { %2877 = vmatpush3.bf16.msra.mxu1 %v3179_v44  ;;  %v3233_v44 = vld [vmem:[#allocation8 + $0x4b0] sm:$0xff]  }
 0x196   :  { %2899 = vmatpush3.bf16.msra.mxu0 %v3180_v45  ;;  %2906 = vmatprep.subr.bf16.mxu1 %v3181_v46  ;;  %v3234_v45 = vld [vmem:[#allocation8 + $0x478] sm:$0xff]  }
 0x197   :  { %2928 = vmatprep.subr.bf16.mxu0 %v3182_v47  ;;  %v3235_v46 = vld [vmem:[#allocation8 + $0x438] sm:$0xff]  }
 0x198   :  { %2331 = vmatmul.mubr.bf16.vlgmr.msra.gmra.mrb[24].mxu1 %v2609_v50  ;;  %v3236_v47 = vld [vmem:[#allocation8 + $0x4b8] sm:$0xff]   ;;  %v2619_v50 = vcombine.high %v3568_v27, %v3568_v27 }
 0x199   :  { %2371 = vmatmul.mubr.bf16.vlgmr.msra.gmra.mrb[28].mxu0 %v2611_v53  ;;  %2907 = vmatpush3.bf16.msra.mxu1 %v3183_v48  ;;  %v2617_v48 = vcombine.high %v3565_v26, %v3565_v26 }
 0x19a   :  { %2410 = vmatprep.mubr.bf16.mxu1 %v2614_v56  ;;  %2929 = vmatpush3.bf16.msra.mxu0 %v3184_v52 }
 0x19b   :  { %2450 = vmatprep.mubr.bf16.mxu0 %v2616_v58  ;;  %2908 = vmatprep.subr.bf16.mxu1 %v3185_v55 }
 0x19c   :  { %2930 = vmatprep.subr.bf16.mxu0 %v3186_v57 }
 0x19d   :  { %2909 = vmatpush3.bf16.msra.mxu1 %v3187_v59 }
 0x19e   :  { %2931 = vmatpush3.bf16.msra.mxu0 %v3188_v28  ;;  %2910 = vmatprep.subr.bf16.mxu1 %v3189_v60 }
 0x19f   :  { %2932 = vmatprep.subr.bf16.mxu0 %v3190_v61 }
 0x1a1   :  { %2911 = vmatpush3.bf16.msra.mxu1 %v3191_v63 }
 0x1a2   :  { %2933 = vmatpush3.bf16.msra.mxu0 %v3192_v2  ;;  %2912 = vmatprep.subr.bf16.mxu1 %v3193_v3 }
 0x1a3   :  { %2934 = vmatprep.subr.bf16.mxu0 %v3194_v5 }
 0x1a5   :  { %2913 = vmatpush3.bf16.msra.mxu1 %v3195_v6 }
 0x1a6   :  { %2935 = vmatpush3.bf16.msra.mxu0 %v3196_v7  ;;  %2914 = vmatprep.subr.bf16.mxu1 %v3197_v49 }
 0x1a7   :  { %2936 = vmatprep.subr.bf16.mxu0 %v3198_v8 }
 0x1a9   :  { %2915 = vmatpush3.bf16.msra.mxu1 %v3199_v11 }
 0x1aa   :  { %2937 = vmatpush3.bf16.msra.mxu0 %v3200_v12  ;;  %2916 = vmatprep.subr.bf16.mxu1 %v3201_v13 }
 0x1ab   :  { %2938 = vmatprep.subr.bf16.mxu0 %v3202_v4 }
 0x1ad   :  { %2917 = vmatpush3.bf16.msra.mxu1 %v3203_v41 }
 0x1ae   :  { %2939 = vmatpush3.bf16.msra.mxu0 %v3204_v62  ;;  %2918 = vmatprep.subr.bf16.mxu1 %v3205_v10 }
 0x1af   :  { %2940 = vmatprep.subr.bf16.mxu0 %v3206_v0 }
 0x1b1   :  { %2919 = vmatpush3.bf16.msra.mxu1 %v3207_v1 }
 0x1b2   :  { %2941 = vmatpush3.bf16.msra.mxu0 %v3208_v14  ;;  %2920 = vmatprep.subr.bf16.mxu1 %v3209_v15 }
 0x1b3   :  { %2942 = vmatprep.subr.bf16.mxu0 %v3210_v16 }
 0x1b5   :  { %2921 = vmatpush3.bf16.msra.mxu1 %v3211_v17 }
 0x1b6   :  { %2943 = vmatpush3.bf16.msra.mxu0 %v3212_v18  ;;  %2950 = vmatprep.subr.bf16.mxu1 %v3213_v19 }
 0x1b7   :  { %2981 = vmatprep.subr.bf16.mxu0 %v3374_v54 }
 0x1b8   :  { %2411 = vmatmul.mubr.bf16.vlgmr.msra.gmra.mrb[28].mxu1 %v2613_v21 }
 0x1b9   :  { %2451 = vmatmul.mubr.bf16.vlgmr.msra.gmra.mrb[32].mxu0 %v2615_v23  ;;  %2951 = vmatpush3.bf16.msra.mxu1 %v3214_v20 }
 0x1ba   :  { %2490 = vmatprep.mubr.bf16.mxu1 %v2618_v24  ;;  %2982 = vmatpush3.bf16.msra.mxu0 %v3215_v22 }
 0x1bb   :  { %2952 = vmatprep.subr.bf16.mxu1 %v3216_v9  ;;  %2983 = vmatprep.subr.bf16.mxu0 %v3374_v54 }
 0x1bc   :  { %2997 = vmatprep.mubr.msk.bf16.mxu0 %vm3375_vm3, %v3374_v54 }
 0x1bd   :  { %2953 = vmatpush3.bf16.msra.mxu1 %v3217_v29 }
 0x1be   :  { %2984 = vmatpush3.bf16.msra.mxu0 %v3218_v30  ;;  %2954 = vmatprep.subr.bf16.mxu1 %v3219_v51 }
 0x1bf   :  { %2985 = vmatprep.subr.bf16.mxu0 %v3374_v54 }
 0x1c1   :  { %2955 = vmatpush3.bf16.msra.mxu1 %v3220_v25 }
 0x1c2   :  { %2986 = vmatpush3.bf16.msra.mxu0 %v3221_v31  ;;  %2956 = vmatprep.subr.bf16.mxu1 %v3222_v32 }
 0x1c3   :  { %2987 = vmatprep.subr.bf16.mxu0 %v3374_v54 }
 0x1c5   :  { %2957 = vmatpush3.bf16.msra.mxu1 %v3223_v33 }
 0x1c6   :  { %2988 = vmatpush3.bf16.msra.mxu0 %v3224_v34  ;;  %2958 = vmatprep.subr.bf16.mxu1 %v3225_v35 }
 0x1c7   :  { %2989 = vmatprep.subr.bf16.mxu0 %v3374_v54 }
 0x1c9   :  { %2959 = vmatpush3.bf16.msra.mxu1 %v3226_v36 }
 0x1ca   :  { %2990 = vmatpush3.bf16.msra.mxu0 %v3227_v37  ;;  %2960 = vmatprep.subr.bf16.mxu1 %v3228_v38 }
 0x1cb   :  { %2991 = vmatprep.subr.bf16.mxu0 %v3374_v54 }
 0x1cd   :  { %2961 = vmatpush3.bf16.msra.mxu1 %v3229_v39 }
 0x1ce   :  { %2992 = vmatpush3.bf16.msra.mxu0 %v3230_v40  ;;  %2962 = vmatprep.subr.bf16.mxu1 %v3231_v42 }
 0x1cf   :  { %2993 = vmatprep.subr.bf16.mxu0 %v3374_v54 }
 0x1d1   :  { %2963 = vmatpush3.bf16.msra.mxu1 %v3232_v43 }
 0x1d2   :  { %2994 = vmatpush3.bf16.msra.mxu0 %v3233_v44  ;;  %2964 = vmatprep.subr.bf16.mxu1 %v3234_v45 }
 0x1d3   :  { %2995 = vmatprep.subr.bf16.mxu0 %v3374_v54 }
 0x1d5   :  { %2965 = vmatpush3.bf16.msra.mxu1 %v3235_v46 }
 0x1d6   :  { %2996 = vmatpush3.bf16.msra.mxu0 %v3236_v47 }
 0x1d8   :  { %2491 = vmatmul.mubr.bf16.vlgmr.msra.gmra.mrb[32].mxu1 %v2617_v48 }
 0x1d9   :  { %2998 = vmatmul.mubr.bf16.vlgmr.msra.gmra.mrb[36].mxu0 %v2619_v50 }
 0x22b   :  { %v2790_v52 = vpop.f32.mrb[16].mxu1 }
 0x22c   :  { %v2812_v53 = vpop.f32.mrb[20].mxu0  ;;  %v2791_v55 = vpop.f32.mrb[17].mxu1 }
 0x22d   :  { %v2813_v56 = vpop.f32.mrb[21].mxu0  ;;  %v2792_v57 = vadd.f32 %v2791_v55, %v2790_v52  ;;  %v2793_v59 = vpop.f32.mrb[18].mxu1 }
 0x22e   :  { %v2814_v58 = vadd.f32 %v2813_v56, %v2812_v53  ;;  %v2815_v28 = vpop.f32.mrb[22].mxu0  ;;  %v2794_v60 = vpop.f32.mrb[19].mxu1 }
 0x22f   :  { %v2816_v61 = vpop.f32.mrb[23].mxu0 }
 0x230   :  { %v2213_v63 = vadd.f32 %v2814_v58, %v2792_v57 }
 0x24b   :  { %v2834_v2 = vpop.f32.mrb[20].mxu1 }
 0x24c   :  { %v2856_v3 = vpop.f32.mrb[24].mxu0  ;;  %v2835_v26 = vpop.f32.mrb[21].mxu1 }
 0x24d   :  { %v2857_v5 = vpop.f32.mrb[25].mxu0  ;;  %v2836_v6 = vadd.f32 %v2835_v26, %v2834_v2  ;;  %v2837_v27 = vpop.f32.mrb[22].mxu1 }
 0x24e   :  { %v2858_v7 = vadd.f32 %v2857_v5, %v2856_v3  ;;  %v2859_v49 = vpop.f32.mrb[26].mxu0  ;;  %v2838_v8 = vpop.f32.mrb[23].mxu1 }
 0x24f   :  { %v2860_v11 = vpop.f32.mrb[27].mxu0  ;;  %v2253_v12 = vadd.f32 %v2836_v6, %v2213_v63 }
 0x251   :  { %v2293_v13 = vadd.f32 %v2858_v7, %v2253_v12 }
 0x26b   :  { %v2878_v4 = vpop.f32.mrb[24].mxu1 }
 0x26c   :  { %v2900_v41 = vpop.f32.mrb[28].mxu0  ;;  %v2879_v62 = vpop.f32.mrb[25].mxu1 }
 0x26d   :  { %v2880_v10 = vadd.f32 %v2879_v62, %v2878_v4  ;;  %v2901_v0 = vpop.f32.mrb[29].mxu0  ;;  %v2881_v1 = vpop.f32.mrb[26].mxu1 }
 0x26e   :  { %v2902_v14 = vadd.f32 %v2901_v0, %v2900_v41  ;;  %v2903_v15 = vpop.f32.mrb[30].mxu0  ;;  %v2882_v16 = vpop.f32.mrb[27].mxu1 }
 0x26f   :  { %v2333_v17 = vadd.f32 %v2880_v10, %v2293_v13  ;;  %v2904_v18 = vpop.f32.mrb[31].mxu0 }
 0x271   :  { %v2373_v19 = vadd.f32 %v2902_v14, %v2333_v17 }
 0x28b   :  { %v2922_v20 = vpop.f32.mrb[28].mxu1 }
 0x28c   :  { %v2944_v21 = vpop.f32.mrb[32].mxu0  ;;  %v2923_v22 = vpop.f32.mrb[29].mxu1 }
 0x28d   :  { %v2924_v23 = vadd.f32 %v2923_v22, %v2922_v20  ;;  %v2945_v54 = vpop.f32.mrb[33].mxu0  ;;  %v2925_v9 = vpop.f32.mrb[30].mxu1 }
 0x28e   :  { %v2946_v24 = vadd.f32 %v2945_v54, %v2944_v21  ;;  %v2947_v29 = vpop.f32.mrb[34].mxu0  ;;  %v2926_v30 = vpop.f32.mrb[31].mxu1 }
 0x28f   :  { %v2413_v51 = vadd.f32 %v2924_v23, %v2373_v19  ;;  %v2948_v25 = vpop.f32.mrb[35].mxu0 }
 0x291   :  { %v2453_v31 = vadd.f32 %v2946_v24, %v2413_v51 }
 0x2ab   :  { %v2966_v32 = vpop.f32.mrb[32].mxu1 }
 0x2ac   :  { %v2532_v33 = vpop.f32.mrb[36].mxu0  ;;  %v2967_v34 = vpop.f32.mrb[33].mxu1 }
 0x2ad   :  { %v2968_v35 = vadd.f32 %v2967_v34, %v2966_v32  ;;  %v2999_v36 = vpop.f32.mrb[37].mxu0  ;;  %v2969_v37 = vpop.f32.mrb[34].mxu1 }
 0x2ae   :  { %v2535_v38 = vpop.f32.mrb[38].mxu0  ;;  %v2970_v39 = vpop.f32.mrb[35].mxu1 }
 0x2af   :  { %v2493_v40 = vadd.f32 %v2968_v35, %v2453_v31  ;;  %v3000_v42 = vpop.f32.mrb[39].mxu0 }
 0x2b1   :  { %v2533_v43 = vadd.f32 %v2532_v33, %v2493_v40 }
 0x2b3   :  { %2538 = vst [vmem:[#allocation10] sm:$0xff] %v2533_v43 }
 0x2b4   :  { %3337 = shalt.err (!%p3334_p8)
}
 0x2b5   :  { %s3338_s15 = scalar_lea.hbm %s3638_s4, 128 }
 0x2b6   :  { %p3339_p9 = scmp.ne.s32.totalorder %s3638_s4, %s3338_s15  ;;  %p3342_p10 = scmp.lt.u32.totalorder %s3338_s15, %s3638_s4 }
 0x2b8   :  { %p3344_p11 = pnand %p3342_p10, %p3339_p9 }
 0x2ba   :  { %3347 = shalt.err (!%p3344_p11)
}
 0x2bb   :  { %2548 = dma.vmem_to_hbm [thread:$0]  %s2546_s11, 128, %s3638_s4, [#allocation4]  }
 0x2bc   :  { %3354 = dma.done.wait [#allocation4], 128  }
 0x2bd   :  { %3355 = vsyncadd [#allocation4], 4294967168 }
 0x2be   :  { %2552 = vsyncpa [#allocation3], 1 }
 0x2bf   :  { %2553 = vsyncpa [#allocation6], 1 }
 0x2c0   :  { %2554 = vsyncpa [#allocation9], 1 }
 0x2c1   :  { %2555 = vsyncpa [#allocation4], 1 }

</bundles_post_ra>
